<compile_context>
chip_gen: v5e
topology: v5e:2x2
jax: 0.10.0
libtpu: 0.0.40
codegen_flags: <defaults>
</compile_context>

<pallas_src>
import functools

import jax
import jax.numpy as jnp
from jax.experimental import pallas as pl
from jax.experimental.pallas import tpu as pltpu


# -----------------------------------------------------------------------------
# Fused kernel: qkv linear -> per-head attention (+RPB) -> output projection
# -----------------------------------------------------------------------------
def _fused_mhsa_kernel(x_ref, qkv_w_ref, qkv_b_ref, bias_ref, proj_w_ref,
                       proj_b_ref, o_ref, *, num_heads, head_dim, dim, bblk, n):
    # x:      (Bblk, N, C)  f32
    # qkv_w:  (C, 3C)       bf16  (softmax scale already folded into q columns)
    # qkv_b:  (1, 3C)       f32   (scale folded into q slice)
    # bias:   (nH, N, N)    bf16  (relative position bias, resident)
    # proj_w: (C, C)        bf16
    # proj_b: (1, C)        f32
    # o:      (Bblk, N, C)  f32
    x2d = x_ref[...].reshape(bblk * n, dim).astype(jnp.bfloat16)
    qkv = jnp.dot(x2d, qkv_w_ref[...],
                  preferred_element_type=jnp.float32) + qkv_b_ref[...]  # (Bblk*N, 3C)

    bias_all = bias_ref[...].astype(jnp.float32)                        # (nH, N, N)

    batch_outs = []
    for b in range(bblk):                     # static unroll over batch block
        row0 = b * n
        q_slab = qkv[row0:row0 + n, 0:dim].astype(jnp.bfloat16)         # (N, C)
        k_slab = qkv[row0:row0 + n, dim:2 * dim].astype(jnp.bfloat16)   # (N, C)
        v_slab = qkv[row0:row0 + n, 2 * dim:3 * dim].astype(jnp.bfloat16)
        head_outs = []
        for h in range(num_heads):            # static unroll over heads
            lo = h * head_dim
            hi = lo + head_dim
            q = q_slab[:, lo:hi]                                        # (N, hd)
            k = k_slab[:, lo:hi]
            v = v_slab[:, lo:hi]
            # QK^T without an explicit transpose: contract the last dims.
            s = jax.lax.dot_general(q, k, (((1,), (1,)), ((), ())),
                                    preferred_element_type=jnp.float32)  # (N, N)
            s = s + bias_all[h]
            m = jnp.max(s, axis=-1, keepdims=True)
            p = jnp.exp(s - m)
            denom = jnp.sum(p, axis=-1, keepdims=True)                  # >= 1
            attn = p * pl.reciprocal(denom, approx=True)                # EUP slot
            head_outs.append(jnp.dot(attn.astype(jnp.bfloat16), v,
                                     preferred_element_type=jnp.float32))
        # One full-width merged-head value per batch element (lane-dense).
        batch_outs.append(jnp.concatenate(head_outs, axis=-1))          # (N, C)

    attn_out = jnp.concatenate(batch_outs, axis=0).astype(jnp.bfloat16)  # (Bblk*N, C)
    proj = jnp.dot(attn_out, proj_w_ref[...],
                   preferred_element_type=jnp.float32) + proj_b_ref[...]
    # Single lane-dense full-width store of the whole output block.
    o_ref[...] = proj.reshape(bblk, n, dim).astype(o_ref.dtype)


def _choose_bblk(B, N, C, target_bytes=256 * 1024):
    """Batch-block size: big enough DMAs, but keep >=2 grid steps when B>=2."""
    per_batch = N * C * 4
    want = max(1, target_bytes // max(1, per_batch))
    if B >= 2:
        want = min(want, max(1, B // 2))      # >=2 steps: pipelining + v7x 2nd TC
    bblk = 1
    for d in range(1, B + 1):                 # largest divisor of B <= want
        if B % d == 0 and d <= want:
            bblk = d
    return bblk


def fused_mhsa_call(x3d, qkv_w, qkv_b, bias, proj_w, proj_b,
                    num_heads, head_dim, bblk):
    B, N, C = x3d.shape
    kernel = functools.partial(_fused_mhsa_kernel, num_heads=num_heads,
                               head_dim=head_dim, dim=C, bblk=bblk, n=N)
    return pl.pallas_call(
        kernel,
        out_shape=jax.ShapeDtypeStruct((B, N, C), jnp.float32),
        grid=(B // bblk,),
        in_specs=[
            pl.BlockSpec((bblk, N, C), lambda i: (i, 0, 0)),
            pl.BlockSpec((C, 3 * C), lambda i: (0, 0)),            # resident weight
            pl.BlockSpec((1, 3 * C), lambda i: (0, 0)),            # resident bias
            pl.BlockSpec((num_heads, N, N), lambda i: (0, 0, 0)),  # resident RPB
            pl.BlockSpec((C, C), lambda i: (0, 0)),                # resident weight
            pl.BlockSpec((1, C), lambda i: (0, 0)),                # resident bias
        ],
        out_specs=pl.BlockSpec((bblk, N, C), lambda i: (i, 0, 0)),
        compiler_params=pltpu.CompilerParams(
            dimension_semantics=("parallel",)),
    )(x3d, qkv_w, qkv_b, bias, proj_w, proj_b)


# -----------------------------------------------------------------------------
# Module: parameter setup + forward
# -----------------------------------------------------------------------------
def make_params(key, dim, input_size, num_heads):
    k1, k2, k3, k4, k5 = jax.random.split(key, 5)
    params = {
        # PyTorch nn.Linear stores weight as (out, in); keep that convention.
        "qkv_w": jax.random.normal(k1, (3 * dim, dim), jnp.float32) * 0.1,
        "qkv_b": jax.random.normal(k2, (3 * dim,), jnp.float32) * 0.1,
        "proj_w": jax.random.normal(k3, (dim, dim), jnp.float32) * 0.1,
        "proj_b": jax.random.normal(k4, (dim,), jnp.float32) * 0.1,
        # rpb: (num_heads, 2*S-1, 2*S-1), trunc_normal(std=0.02) ~ normal*0.02
        "rpb": jax.random.normal(
            k5, (num_heads, 2 * input_size - 1, 2 * input_size - 1), jnp.float32
        ) * 0.02,
    }
    return params


def relative_position_index(S):
    coords_h = jnp.arange(S)
    coords_w = jnp.arange(S)
    coords = jnp.stack(jnp.meshgrid(coords_h, coords_w, indexing="ij"))  # (2,S,S)
    coords_flatten = coords.reshape(2, -1)                               # (2, N)
    rel = coords_flatten[:, :, None] - coords_flatten[:, None, :]        # (2, N, N)
    rel = rel.transpose(1, 2, 0)                                         # (N, N, 2)
    rel = rel.at[:, :, 0].add(S - 1)
    rel = rel.at[:, :, 1].add(S - 1)
    rel = rel.at[:, :, 0].multiply(2 * S - 1)
    return jnp.flipud(jnp.fliplr(rel.sum(-1)))                           # (N, N)


def build_rpb_bias(rpb, rpi, num_heads, N):
    # rpb: (nH, 2S-1, 2S-1) -> table ((2S-1)^2, nH) -> gather -> (nH, N, N)
    table = rpb.transpose(1, 2, 0).reshape(-1, num_heads)
    bias = table[rpi.reshape(-1)].reshape(N, N, num_heads).transpose(2, 0, 1)
    return bias


def mhsa_rpb_forward(params, x, input_size, num_heads):
    B, H, W, C = x.shape
    N = H * W
    assert N == input_size * input_size
    head_dim = C // num_heads
    scale = head_dim ** (-0.5)

    # One-shot preprocessing (fused by XLA, constant w.r.t. x): fold softmax
    # scale into the q slice, transpose to (Cin, Cout), cast weights to bf16.
    scale_vec = jnp.concatenate(
        [jnp.full((C,), scale, jnp.float32), jnp.ones((2 * C,), jnp.float32)])
    qkv_w_prep = (params["qkv_w"] * scale_vec[:, None]).T.astype(jnp.bfloat16)
    qkv_b_prep = (params["qkv_b"] * scale_vec).reshape(1, 3 * C)
    proj_w_prep = params["proj_w"].T.astype(jnp.bfloat16)
    proj_b_prep = params["proj_b"].reshape(1, C)

    # Relative position bias (small gather, plain JAX), resident in VMEM as bf16.
    rpi = relative_position_index(input_size)
    bias = build_rpb_bias(params["rpb"], rpi, num_heads, N).astype(jnp.bfloat16)

    bblk = _choose_bblk(B, N, C)
    out = fused_mhsa_call(x.reshape(B, N, C), qkv_w_prep, qkv_b_prep, bias,
                          proj_w_prep, proj_b_prep, num_heads, head_dim, bblk)
    return out.reshape(B, H, W, C)


# -----------------------------------------------------------------------------
# Pure-JAX f32 reference for verification
# -----------------------------------------------------------------------------
def reference_forward(params, x, input_size, num_heads):
    B, H, W, C = x.shape
    N = H * W
    head_dim = C // num_heads
    scale = head_dim ** (-0.5)
    qkv = x.reshape(B * N, C) @ params["qkv_w"].T + params["qkv_b"]
    qkv = qkv.reshape(B, N, 3, num_heads, head_dim).transpose(2, 0, 3, 1, 4)
    q, k, v = qkv[0], qkv[1], qkv[2]
    attn = (q * scale) @ k.transpose(0, 1, 3, 2)
    rpi = relative_position_index(input_size)
    bias = build_rpb_bias(params["rpb"], rpi, num_heads, N)
    attn = attn + bias[None]
    attn = jax.nn.softmax(attn, axis=-1)
    out = (attn @ v).transpose(0, 2, 1, 3).reshape(B * N, C)
    out = out @ params["proj_w"].T + params["proj_b"]
    return out.reshape(B, H, W, C)


# -----------------------------------------------------------------------------
if __name__ == "__main__":
    B, S, C, num_heads = 2, 8, 32, 4  # x: (2, 8, 8, 32), N = 64, head_dim = 8
    key = jax.random.PRNGKey(0)
    kx, kp = jax.random.split(key)
    x = jax.random.normal(kx, (B, S, S, C), jnp.float32)
    params = make_params(kp, C, S, num_heads)

    fwd = jax.jit(mhsa_rpb_forward, static_argnums=(2, 3))
    y = jax.block_until_ready(fwd(params, x, S, num_heads))

    y_ref = reference_forward(params, x, S, num_heads)
    assert y.shape == (B, S, S, C)
    err = float(jnp.max(jnp.abs(y - y_ref)))
    # bf16 MXU operands/weights/bias + approx reciprocal -> relaxed tolerance.
    assert err < 2e-2, f"mismatch vs reference: max abs err {err}"

    print("KERNEL_OK")
</pallas_src>

<mosaic_0001>
module attributes {stable_mosaic.version = 11 : i64} {
  func.func @_fused_mhsa_kernel(%arg0: i32, %arg1: memref<1x64x32xf32, #tpu.memory_space<vmem>>, %arg2: memref<32x96xbf16, #tpu.memory_space<vmem>>, %arg3: memref<1x96xf32, #tpu.memory_space<vmem>>, %arg4: memref<4x64x64xbf16, #tpu.memory_space<vmem>>, %arg5: memref<32x32xbf16, #tpu.memory_space<vmem>>, %arg6: memref<1x32xf32, #tpu.memory_space<vmem>>, %arg7: memref<1x64x32xf32, #tpu.memory_space<vmem>>) attributes {dimension_semantics = [#tpu.dimension_semantics<parallel>], iteration_bounds = array<i64: 2>, scalar_prefetch = 0 : i64, scratch_operands = 0 : i64, tpu.core_type = #tpu.core_type<tc>, window_params = [{transform_indices = @transform_0, window_bounds = array<i64: 1, 64, 32>}, {pipeline_mode = #tpu.pipeline_mode<synchronous>, transform_indices = @transform_1, window_bounds = array<i64: 32, 96>}, {pipeline_mode = #tpu.pipeline_mode<synchronous>, transform_indices = @transform_2, window_bounds = array<i64: 1, 96>}, {pipeline_mode = #tpu.pipeline_mode<synchronous>, transform_indices = @transform_3, window_bounds = array<i64: 4, 64, 64>}, {pipeline_mode = #tpu.pipeline_mode<synchronous>, transform_indices = @transform_4, window_bounds = array<i64: 32, 32>}, {pipeline_mode = #tpu.pipeline_mode<synchronous>, transform_indices = @transform_5, window_bounds = array<i64: 1, 32>}, {transform_indices = @transform_6, window_bounds = array<i64: 1, 64, 32>}]} {
    %c0 = arith.constant 0 : index
    %c0_0 = arith.constant 0 : index
    %c0_1 = arith.constant 0 : index
    %0 = vector.load %arg1[%c0, %c0_0, %c0_1] : memref<1x64x32xf32, #tpu.memory_space<vmem>>, vector<1x64x32xf32>
    %1 = vector.shape_cast %0 : vector<1x64x32xf32> to vector<64x32xf32>
    %2 = arith.truncf %1 : vector<64x32xf32> to vector<64x32xbf16>
    %c0_2 = arith.constant 0 : index
    %c0_3 = arith.constant 0 : index
    %3 = vector.load %arg2[%c0_2, %c0_3] : memref<32x96xbf16, #tpu.memory_space<vmem>>, vector<32x96xbf16>
    %cst = arith.constant dense<0.000000e+00> : vector<64x96xf32>
    %4 = tpu.matmul %2, %3, %cst {dimension_numbers = #tpu.dot_dimension_numbers<[1], [0], [0], [1], [0, 0, 1, 1], [], []>} : vector<64x32xbf16>, vector<32x96xbf16>, vector<64x96xf32> -> vector<64x96xf32>
    %c0_4 = arith.constant 0 : index
    %c0_5 = arith.constant 0 : index
    %5 = vector.load %arg3[%c0_4, %c0_5] : memref<1x96xf32, #tpu.memory_space<vmem>>, vector<1x96xf32>
    %6 = vector.broadcast %5 : vector<1x96xf32> to vector<64x96xf32>
    %7 = arith.addf %4, %6 : vector<64x96xf32>
    %c0_6 = arith.constant 0 : index
    %c0_7 = arith.constant 0 : index
    %c0_8 = arith.constant 0 : index
    %8 = vector.load %arg4[%c0_6, %c0_7, %c0_8] : memref<4x64x64xbf16, #tpu.memory_space<vmem>>, vector<4x64x64xbf16>
    %9 = arith.extf %8 : vector<4x64x64xbf16> to vector<4x64x64xf32>
    %10 = vector.extract_strided_slice %7 {offsets = [0, 0], sizes = [64, 32], strides = [1, 1]} : vector<64x96xf32> to vector<64x32xf32>
    %11 = arith.truncf %10 : vector<64x32xf32> to vector<64x32xbf16>
    %12 = vector.extract_strided_slice %7 {offsets = [0, 32], sizes = [64, 32], strides = [1, 1]} : vector<64x96xf32> to vector<64x32xf32>
    %13 = arith.truncf %12 : vector<64x32xf32> to vector<64x32xbf16>
    %14 = vector.extract_strided_slice %7 {offsets = [0, 64], sizes = [64, 32], strides = [1, 1]} : vector<64x96xf32> to vector<64x32xf32>
    %15 = arith.truncf %14 : vector<64x32xf32> to vector<64x32xbf16>
    %16 = vector.extract_strided_slice %11 {offsets = [0, 0], sizes = [64, 8], strides = [1, 1]} : vector<64x32xbf16> to vector<64x8xbf16>
    %17 = vector.extract_strided_slice %13 {offsets = [0, 0], sizes = [64, 8], strides = [1, 1]} : vector<64x32xbf16> to vector<64x8xbf16>
    %18 = vector.extract_strided_slice %15 {offsets = [0, 0], sizes = [64, 8], strides = [1, 1]} : vector<64x32xbf16> to vector<64x8xbf16>
    %cst_9 = arith.constant dense<0.000000e+00> : vector<64x64xf32>
    %19 = tpu.matmul %16, %17, %cst_9 {dimension_numbers = #tpu.dot_dimension_numbers<[1], [1], [0], [0], [0, 0, 1, 0], [], []>} : vector<64x8xbf16>, vector<64x8xbf16>, vector<64x64xf32> -> vector<64x64xf32>
    %20 = vector.extract_strided_slice %9 {offsets = [0, 0, 0], sizes = [1, 64, 64], strides = [1, 1, 1]} : vector<4x64x64xf32> to vector<1x64x64xf32>
    %21 = vector.shape_cast %20 : vector<1x64x64xf32> to vector<64x64xf32>
    %22 = arith.addf %19, %21 : vector<64x64xf32>
    %cst_10 = arith.constant dense<0xFF800000> : vector<64xf32>
    %23 = vector.multi_reduction <maximumf>, %22, %cst_10 [1] : vector<64x64xf32> to vector<64xf32>
    %24 = vector.shape_cast %23 : vector<64xf32> to vector<64x1xf32>
    %25 = vector.broadcast %24 : vector<64x1xf32> to vector<64x64xf32>
    %26 = arith.subf %22, %25 : vector<64x64xf32>
    %27 = math.exp %26 : vector<64x64xf32>
    %cst_11 = arith.constant dense<0.000000e+00> : vector<64xf32>
    %28 = vector.multi_reduction <add>, %27, %cst_11 [1] : vector<64x64xf32> to vector<64xf32>
    %29 = vector.shape_cast %28 : vector<64xf32> to vector<64x1xf32>
    %30 = tpu.reciprocal %29 {approx = true} : vector<64x1xf32> -> vector<64x1xf32>
    %31 = vector.broadcast %30 : vector<64x1xf32> to vector<64x64xf32>
    %32 = arith.mulf %27, %31 : vector<64x64xf32>
    %33 = arith.truncf %32 : vector<64x64xf32> to vector<64x64xbf16>
    %cst_12 = arith.constant dense<0.000000e+00> : vector<64x8xf32>
    %34 = tpu.matmul %33, %18, %cst_12 {dimension_numbers = #tpu.dot_dimension_numbers<[1], [0], [0], [1], [0, 0, 1, 1], [], []>} : vector<64x64xbf16>, vector<64x8xbf16>, vector<64x8xf32> -> vector<64x8xf32>
    %35 = vector.extract_strided_slice %11 {offsets = [0, 8], sizes = [64, 8], strides = [1, 1]} : vector<64x32xbf16> to vector<64x8xbf16>
    %36 = vector.extract_strided_slice %13 {offsets = [0, 8], sizes = [64, 8], strides = [1, 1]} : vector<64x32xbf16> to vector<64x8xbf16>
    %37 = vector.extract_strided_slice %15 {offsets = [0, 8], sizes = [64, 8], strides = [1, 1]} : vector<64x32xbf16> to vector<64x8xbf16>
    %cst_13 = arith.constant dense<0.000000e+00> : vector<64x64xf32>
    %38 = tpu.matmul %35, %36, %cst_13 {dimension_numbers = #tpu.dot_dimension_numbers<[1], [1], [0], [0], [0, 0, 1, 0], [], []>} : vector<64x8xbf16>, vector<64x8xbf16>, vector<64x64xf32> -> vector<64x64xf32>
    %39 = vector.extract_strided_slice %9 {offsets = [1, 0, 0], sizes = [1, 64, 64], strides = [1, 1, 1]} : vector<4x64x64xf32> to vector<1x64x64xf32>
    %40 = vector.shape_cast %39 : vector<1x64x64xf32> to vector<64x64xf32>
    %41 = arith.addf %38, %40 : vector<64x64xf32>
    %cst_14 = arith.constant dense<0xFF800000> : vector<64xf32>
    %42 = vector.multi_reduction <maximumf>, %41, %cst_14 [1] : vector<64x64xf32> to vector<64xf32>
    %43 = vector.shape_cast %42 : vector<64xf32> to vector<64x1xf32>
    %44 = vector.broadcast %43 : vector<64x1xf32> to vector<64x64xf32>
    %45 = arith.subf %41, %44 : vector<64x64xf32>
    %46 = math.exp %45 : vector<64x64xf32>
    %cst_15 = arith.constant dense<0.000000e+00> : vector<64xf32>
    %47 = vector.multi_reduction <add>, %46, %cst_15 [1] : vector<64x64xf32> to vector<64xf32>
    %48 = vector.shape_cast %47 : vector<64xf32> to vector<64x1xf32>
    %49 = tpu.reciprocal %48 {approx = true} : vector<64x1xf32> -> vector<64x1xf32>
    %50 = vector.broadcast %49 : vector<64x1xf32> to vector<64x64xf32>
    %51 = arith.mulf %46, %50 : vector<64x64xf32>
    %52 = arith.truncf %51 : vector<64x64xf32> to vector<64x64xbf16>
    %cst_16 = arith.constant dense<0.000000e+00> : vector<64x8xf32>
    %53 = tpu.matmul %52, %37, %cst_16 {dimension_numbers = #tpu.dot_dimension_numbers<[1], [0], [0], [1], [0, 0, 1, 1], [], []>} : vector<64x64xbf16>, vector<64x8xbf16>, vector<64x8xf32> -> vector<64x8xf32>
    %54 = vector.extract_strided_slice %11 {offsets = [0, 16], sizes = [64, 8], strides = [1, 1]} : vector<64x32xbf16> to vector<64x8xbf16>
    %55 = vector.extract_strided_slice %13 {offsets = [0, 16], sizes = [64, 8], strides = [1, 1]} : vector<64x32xbf16> to vector<64x8xbf16>
    %56 = vector.extract_strided_slice %15 {offsets = [0, 16], sizes = [64, 8], strides = [1, 1]} : vector<64x32xbf16> to vector<64x8xbf16>
    %cst_17 = arith.constant dense<0.000000e+00> : vector<64x64xf32>
    %57 = tpu.matmul %54, %55, %cst_17 {dimension_numbers = #tpu.dot_dimension_numbers<[1], [1], [0], [0], [0, 0, 1, 0], [], []>} : vector<64x8xbf16>, vector<64x8xbf16>, vector<64x64xf32> -> vector<64x64xf32>
    %58 = vector.extract_strided_slice %9 {offsets = [2, 0, 0], sizes = [1, 64, 64], strides = [1, 1, 1]} : vector<4x64x64xf32> to vector<1x64x64xf32>
    %59 = vector.shape_cast %58 : vector<1x64x64xf32> to vector<64x64xf32>
    %60 = arith.addf %57, %59 : vector<64x64xf32>
    %cst_18 = arith.constant dense<0xFF800000> : vector<64xf32>
    %61 = vector.multi_reduction <maximumf>, %60, %cst_18 [1] : vector<64x64xf32> to vector<64xf32>
    %62 = vector.shape_cast %61 : vector<64xf32> to vector<64x1xf32>
    %63 = vector.broadcast %62 : vector<64x1xf32> to vector<64x64xf32>
    %64 = arith.subf %60, %63 : vector<64x64xf32>
    %65 = math.exp %64 : vector<64x64xf32>
    %cst_19 = arith.constant dense<0.000000e+00> : vector<64xf32>
    %66 = vector.multi_reduction <add>, %65, %cst_19 [1] : vector<64x64xf32> to vector<64xf32>
    %67 = vector.shape_cast %66 : vector<64xf32> to vector<64x1xf32>
    %68 = tpu.reciprocal %67 {approx = true} : vector<64x1xf32> -> vector<64x1xf32>
    %69 = vector.broadcast %68 : vector<64x1xf32> to vector<64x64xf32>
    %70 = arith.mulf %65, %69 : vector<64x64xf32>
    %71 = arith.truncf %70 : vector<64x64xf32> to vector<64x64xbf16>
    %cst_20 = arith.constant dense<0.000000e+00> : vector<64x8xf32>
    %72 = tpu.matmul %71, %56, %cst_20 {dimension_numbers = #tpu.dot_dimension_numbers<[1], [0], [0], [1], [0, 0, 1, 1], [], []>} : vector<64x64xbf16>, vector<64x8xbf16>, vector<64x8xf32> -> vector<64x8xf32>
    %73 = vector.extract_strided_slice %11 {offsets = [0, 24], sizes = [64, 8], strides = [1, 1]} : vector<64x32xbf16> to vector<64x8xbf16>
    %74 = vector.extract_strided_slice %13 {offsets = [0, 24], sizes = [64, 8], strides = [1, 1]} : vector<64x32xbf16> to vector<64x8xbf16>
    %75 = vector.extract_strided_slice %15 {offsets = [0, 24], sizes = [64, 8], strides = [1, 1]} : vector<64x32xbf16> to vector<64x8xbf16>
    %cst_21 = arith.constant dense<0.000000e+00> : vector<64x64xf32>
    %76 = tpu.matmul %73, %74, %cst_21 {dimension_numbers = #tpu.dot_dimension_numbers<[1], [1], [0], [0], [0, 0, 1, 0], [], []>} : vector<64x8xbf16>, vector<64x8xbf16>, vector<64x64xf32> -> vector<64x64xf32>
    %77 = vector.extract_strided_slice %9 {offsets = [3, 0, 0], sizes = [1, 64, 64], strides = [1, 1, 1]} : vector<4x64x64xf32> to vector<1x64x64xf32>
    %78 = vector.shape_cast %77 : vector<1x64x64xf32> to vector<64x64xf32>
    %79 = arith.addf %76, %78 : vector<64x64xf32>
    %cst_22 = arith.constant dense<0xFF800000> : vector<64xf32>
    %80 = vector.multi_reduction <maximumf>, %79, %cst_22 [1] : vector<64x64xf32> to vector<64xf32>
    %81 = vector.shape_cast %80 : vector<64xf32> to vector<64x1xf32>
    %82 = vector.broadcast %81 : vector<64x1xf32> to vector<64x64xf32>
    %83 = arith.subf %79, %82 : vector<64x64xf32>
    %84 = math.exp %83 : vector<64x64xf32>
    %cst_23 = arith.constant dense<0.000000e+00> : vector<64xf32>
    %85 = vector.multi_reduction <add>, %84, %cst_23 [1] : vector<64x64xf32> to vector<64xf32>
    %86 = vector.shape_cast %85 : vector<64xf32> to vector<64x1xf32>
    %87 = tpu.reciprocal %86 {approx = true} : vector<64x1xf32> -> vector<64x1xf32>
    %88 = vector.broadcast %87 : vector<64x1xf32> to vector<64x64xf32>
    %89 = arith.mulf %84, %88 : vector<64x64xf32>
    %90 = arith.truncf %89 : vector<64x64xf32> to vector<64x64xbf16>
    %cst_24 = arith.constant dense<0.000000e+00> : vector<64x8xf32>
    %91 = tpu.matmul %90, %75, %cst_24 {dimension_numbers = #tpu.dot_dimension_numbers<[1], [0], [0], [1], [0, 0, 1, 1], [], []>} : vector<64x64xbf16>, vector<64x8xbf16>, vector<64x8xf32> -> vector<64x8xf32>
    %92 = tpu.concatenate %34, %53, %72, %91 in 1 : vector<64x8xf32>, vector<64x8xf32>, vector<64x8xf32>, vector<64x8xf32> -> vector<64x32xf32>
    %93 = arith.truncf %92 : vector<64x32xf32> to vector<64x32xbf16>
    %c0_25 = arith.constant 0 : index
    %c0_26 = arith.constant 0 : index
    %94 = vector.load %arg5[%c0_25, %c0_26] : memref<32x32xbf16, #tpu.memory_space<vmem>>, vector<32x32xbf16>
    %cst_27 = arith.constant dense<0.000000e+00> : vector<64x32xf32>
    %95 = tpu.matmul %93, %94, %cst_27 {dimension_numbers = #tpu.dot_dimension_numbers<[1], [0], [0], [1], [0, 0, 1, 1], [], []>} : vector<64x32xbf16>, vector<32x32xbf16>, vector<64x32xf32> -> vector<64x32xf32>
    %c0_28 = arith.constant 0 : index
    %c0_29 = arith.constant 0 : index
    %96 = vector.load %arg6[%c0_28, %c0_29] : memref<1x32xf32, #tpu.memory_space<vmem>>, vector<1x32xf32>
    %97 = vector.broadcast %96 : vector<1x32xf32> to vector<64x32xf32>
    %98 = arith.addf %95, %97 : vector<64x32xf32>
    %99 = vector.shape_cast %98 : vector<64x32xf32> to vector<1x64x32xf32>
    %c0_30 = arith.constant 0 : index
    %c0_31 = arith.constant 0 : index
    %c0_32 = arith.constant 0 : index
    %100 = vector.load %arg7[%c0_30, %c0_31, %c0_32] : memref<1x64x32xf32, #tpu.memory_space<vmem>>, vector<1x64x32xf32>
    tpu.vector_store %arg7[%c0_30, %c0_31, %c0_32], %99 {strides = array<i32>} : memref<1x64x32xf32, #tpu.memory_space<vmem>>, vector<1x64x32xf32>,
    return
  }
  func.func @transform_0(%arg0: i32) -> (i32, i32, i32) {
    %c0_i32 = arith.constant 0 : i32
    %c0_i32_0 = arith.constant 0 : i32
    %c0_i32_1 = arith.constant 0 : i32
    return %arg0, %c0_i32, %c0_i32_0 : i32, i32, i32
  }
  func.func @transform_1(%arg0: i32) -> (i32, i32) {
    %c0_i32 = arith.constant 0 : i32
    %c0_i32_0 = arith.constant 0 : i32
    %c0_i32_1 = arith.constant 0 : i32
    return %c0_i32, %c0_i32_0 : i32, i32
  }
  func.func @transform_2(%arg0: i32) -> (i32, i32) {
    %c0_i32 = arith.constant 0 : i32
    %c0_i32_0 = arith.constant 0 : i32
    %c0_i32_1 = arith.constant 0 : i32
    return %c0_i32, %c0_i32_0 : i32, i32
  }
  func.func @transform_3(%arg0: i32) -> (i32, i32, i32) {
    %c0_i32 = arith.constant 0 : i32
    %c0_i32_0 = arith.constant 0 : i32
    %c0_i32_1 = arith.constant 0 : i32
    %c0_i32_2 = arith.constant 0 : i32
    return %c0_i32, %c0_i32_0, %c0_i32_1 : i32, i32, i32
  }
  func.func @transform_4(%arg0: i32) -> (i32, i32) {
    %c0_i32 = arith.constant 0 : i32
    %c0_i32_0 = arith.constant 0 : i32
    %c0_i32_1 = arith.constant 0 : i32
    return %c0_i32, %c0_i32_0 : i32, i32
  }
  func.func @transform_5(%arg0: i32) -> (i32, i32) {
    %c0_i32 = arith.constant 0 : i32
    %c0_i32_0 = arith.constant 0 : i32
    %c0_i32_1 = arith.constant 0 : i32
    return %c0_i32, %c0_i32_0 : i32, i32
  }
  func.func @transform_6(%arg0: i32) -> (i32, i32, i32) {
    %c0_i32 = arith.constant 0 : i32
    %c0_i32_0 = arith.constant 0 : i32
    %c0_i32_1 = arith.constant 0 : i32
    return %arg0, %c0_i32, %c0_i32_0 : i32, i32, i32
  }
}

</mosaic_0001>

<bundles_post_ra>
// kernel: sub.8
= control target key start
LH: loop header
LB: loop body
LE: loop exit
PB: predicated region body
PF: predicated region fallthrough
CT: control target
= control target key end

     0   :  { %s7_s6 = smov 3  ;;  %s21_s9 = smov 3  ;;  %vm4_vm0 = vcmask 64512   ;;  %vm11_vm1 = vcmask 523712   ;;  %vm18_vm2 = vcmask 458112   ;;  %vm25_vm3 = vcmask 392512   ;;  %s119_s0 = inlined_call_operand.vmem [shape: s32[2,8,8], index: 0, kind: input, shape index: {}]   ;;  %s120_s1 = inlined_call_operand.vmem [shape: s32[2,64], index: 1, kind: output, shape index: {}]  }
   0x1   :  { %v61_v0 = vld [vmem:[%s119_s0 + $0x7] ss:$8 sm:%s7_s6]   ;;  %s75_s10 = smov 56   ;;  %v63_v1 = vld [vmem:[%s119_s0 + $0x5] ss:$8 sm:%s21_s9]   ;;  %s76_s13 = smov 40  }
   0x2   :  { %9 = vrot.lane.b32.xlu0 %v61_v0, %s75_s10  ;;  %23 = vrot.lane.b32.xlu1 %v63_v1, %s76_s13  ;;  %s14_s14 = smov 3  ;;  %s28_s15 = smov 3  ;;  %vm32_vm4 = vcmask 326912   ;;  %vm39_vm5 = vcmask 261312   ;;  %vm46_vm6 = vcmask 195712   ;;  %vm53_vm7 = vcmask 130112  }
   0x3   :  { %s35_s16 = smov 3  ;;  %v62_v3 = vld [vmem:[%s119_s0 + $0x6] ss:$8 sm:%s14_s14]   ;;  %s77_s21 = smov 24   ;;  %v64_v4 = vld [vmem:[%s119_s0 + $0x4] ss:$8 sm:%s28_s15]  }
   0x4   :  { %v65_v2 = vld [vmem:[%s119_s0 + $0x3] ss:$8 sm:%s35_s16]   ;;  %s42_s24 = smov 3  ;;  %s78_s25 = smov 48  }
   0x5   :  { %37 = vrot.lane.b32.xlu2 %v65_v2, %s77_s21  ;;  %s79_s26 = smov 32   ;;  %s49_s27 = smov 3  ;;  %v66_v5 = vld [vmem:[%s119_s0 + $0x2] ss:$8 sm:%s42_s24]  }
   0x6   :  { %v67_v6 = vld [vmem:[%s119_s0 + $0x1] ss:$8 sm:%s49_s27]   ;;  %s80_s3 = smov 16   ;;  %s81_s4 = smov 8  }
   0x7   :  { %s2_s5 = smov 3 }
   0x8   :  { %v3_v7 = vld [vmem:[%s119_s0] ss:$8 sm:%s2_s5]  }
   0x9   :  { %5 = vst.msk [vmem:[#allocation0] sm:$0x3] %vm4_vm0, %v3_v7  }
   0xa   :  { %16 = vrot.lane.b32.xlu0 %v62_v3, %s78_s25  ;;  %30 = vrot.lane.b32.xlu1 %v64_v4, %s79_s26 }
   0xd   :  { %44 = vrot.lane.b32.xlu2 %v66_v5, %s80_s3 }
  0x12   :  { %51 = vrot.lane.b32.xlu0 %v67_v6, %s81_s4 }
  0x5f   :  { %v38_v8 = vpop.permute.xlu2 %37  }
  0x67   :  { %v45_v9 = vpop.permute.xlu2 %44  }
  0x74   :  { %v10_v10 = vpop.permute.xlu0 %9   ;;  %v24_v11 = vpop.permute.xlu1 %23  }
  0x75   :  { %12 = vst.msk [vmem:[#allocation0] sm:$0x3] %vm11_vm1, %v10_v10  }
  0x7c   :  { %v17_v12 = vpop.permute.xlu0 %16   ;;  %v31_v13 = vpop.permute.xlu1 %30  }
  0x7d   :  { %19 = vst.msk [vmem:[#allocation0] sm:$0x3] %vm18_vm2, %v17_v12  }
  0x7e   :  { %26 = vst.msk [vmem:[#allocation0] sm:$0x3] %vm25_vm3, %v24_v11  }
  0x7f   :  { %33 = vst.msk [vmem:[#allocation0] sm:$0x3] %vm32_vm4, %v31_v13  }
  0x80   :  { %40 = vst.msk [vmem:[#allocation0] sm:$0x3] %vm39_vm5, %v38_v8  }
  0x81   :  { %47 = vst.msk [vmem:[#allocation0] sm:$0x3] %vm46_vm6, %v45_v9  }
  0x84   :  { %v52_v14 = vpop.permute.xlu0 %51  }
  0x85   :  { %54 = vst.msk [vmem:[#allocation0] sm:$0x3] %vm53_vm7, %v52_v14  }
  0x8c   :  { %v57_v15 = vld [vmem:[#allocation0] sm:$0x3] }
  0x8d   :  { %60 = vst [vmem:[%s120_s1] sm:$0x3] %v57_v15 }

// kernel: mhsa_rpb_forward.1
= control target key start
LH: loop header
LB: loop body
LE: loop exit
PB: predicated region body
PF: predicated region fallthrough
CT: control target
= control target key end

     0   :  { %11 = vsyncpa [#allocation3], 0  ;;  %s2769_s0 = inlined_call_operand.vmem [shape: f32[2,64,32], index: 0, kind: input, shape index: {}]   ;;  %s2770_s1 = inlined_call_operand.vmem [shape: bf16[32,96], index: 1, kind: input, shape index: {}]   ;;  %s2771_s2 = inlined_call_operand.vmem [shape: f32[1,96], index: 2, kind: input, shape index: {}]   ;;  %s2772_s3 = inlined_call_operand.vmem [shape: bf16[4,64,64], index: 3, kind: input, shape index: {}]   ;;  %s2773_s4 = inlined_call_operand.vmem [shape: bf16[32,32], index: 4, kind: input, shape index: {}]   ;;  %s2774_s5 = inlined_call_operand.vmem [shape: f32[1,32], index: 5, kind: input, shape index: {}]   ;;  %s2775_s6 = inlined_call_operand.hbm [shape: f32[2,64,32], index: 6, kind: output, shape index: {}]  }
   0x1   :  { %13 = vsyncpa [#allocation3 + $0x1], 0  ;;  %s2061_s21 = smov 0   ;;  %s2063_s22 = smov 0  }
   0x2   :  { %s2065_s23 = smov 0   ;;  %s2067_s24 = smov 0  }
   0x3 LB: > { %s2082_s25 = sadd.s32 4294967295, %s2009_s24   ;;  %s1540_s26 = sadd.s32 4294967294, %s2009_s24   ;;  %s2009_s24 = sphi %s2067_s24, %s2781_s24   ;;  %s2005_s23 = sphi %s2065_s23, %s2780_s23   ;;  %s2001_s22 = sphi %s2063_s22, %s2779_s22   ;;  %s1997_s21 = sphi %s2061_s21, %s2778_s21  }
   0x4   : > { %s2086_s27 = sadd.s32 1, %s2009_s24   ;;  %s157_s28 = sadd.s32 1, %s2005_s23 }
   0x5   : > { %s154_s29 = ssub.s32 %s2009_s24, %s2086_s27  ;;  %p167_p0 = scmp.ne.s32.totalorder %s2005_s23, %s2001_s22 }
   0x6   : > { %p155_p1 = scmp.eq.s32.totalorder %s154_s29, 0  ;;  %p168_p2 = scmp.eq.s32.totalorder %s2082_s25, 1 }
   0x7   : > { %p173_p3 = scmp.ne.s32.totalorder %s2001_s22, %s1997_s21  ;;  %p174_p4 = scmp.eq.s32.totalorder %s1540_s26, 1 }
   0x8   : > { %s2097_s30 = scalar_select %p155_p1, %s2005_s23, %s157_s28  }
   0x9   : > { %p2099_p5 = por %p168_p2, %p167_p0  ;;  %p2103_p6 = por %p174_p4, %p173_p3 }
   0xa   : > { %p1543_p7 = scmp.ge.s32.totalorder %s2009_s24, 1  ;;  %p215_p8 = scmp.lt.s32.totalorder %s2009_s24, 3 }
   0xc   : > { %p216_p9 = pnand %p1543_p7, %p215_p8 }
   0xd   : > { %p245_p10 = scmp.lt.s32.totalorder (!%p216_p9), %s2082_s25, 1  ;;  %s2011_s20 = smov (!%p216_p9), 88  }
   0xe   : > { %219 = sbr.rel (%p216_p9) target bundleno = 1845 (0x735), region = 44  ;;  %s2012_s26 = smov (!%p216_p9), 96  }
   0xf   : > { %s2013_s28 = smov (!%p216_p9), 64   ;;  %s2014_s29 = smov (!%p216_p9), 80  }
  0x10   : > { %s2015_s9 = smov (!%p216_p9), 120   ;;  %s2016_s10 = smov (!%p216_p9), 72  }
  0x11   : > { %s2017_s11 = smov (!%p216_p9), 112   ;;  %s2018_s12 = smov (!%p216_p9), 104  }
  0x12   : > { %s2022_s18 = smov (!%p216_p9), 8   ;;  %s2023_s19 = smov (!%p216_p9), 24  }
  0x13   : > { %v1610_v0 = vld [vmem:[%s2770_s1 + $0x8] sm:$0xff]  ;;  %v1609_v1 = vld [vmem:[%s2770_s1] sm:$0xff]  ;;  %s246_s13 = scalar_select %p245_p10, %s2082_s25, 1  ;;  %vm283_vm0 = vcmask 261120   ;;  %vm425_vm1 = vcmask 64512   ;;  %vm479_vm2 = vcmask 523264  }
  0x14   : > { %1693 = vmatpush.bf16.msra.mxu3 %v1610_v0  ;;  %302 = vmatpush.bf16.msra.mxu0 %v1610_v0  ;;  %v1817_v15 = vld [vmem:[%s2771_s2] ss:$0 sm:$0xff]  ;;  %vm1371_vm3 = vcmask 130048   ;;  %vm1380_vm4 = vcmask 195584   ;;  %s1613_s15 = sshll.u32 %s2082_s25, 6 }
  0x15   : > { %s1608_s14 = sshll.u32 %s246_s13, 6 }
  0x16   : > { %s249_s17 = scalar_lea.vmem %s2769_s0, %s1608_s14  ;;  %s2019_s14 = smov 56  }
  0x17   : > { %v253_v2 = vld [vmem:[%s249_s17 + $0x10] sm:$0xff]  ;;  %v254_v3 = vld [vmem:[%s249_s17 + $0x18] sm:$0xff]  ;;  %v251_v4 = vld [vmem:[%s249_s17] sm:$0xff] }
  0x18   : > { %1694 = vmatpush.bf16.msra.mxu3 %v1609_v1  ;;  %303 = vmatpush.bf16.msra.mxu0 %v1609_v1  ;;  %v260_v5 = vpack.c.bf16 %v254_v3, %v253_v2  ;;  %v252_v6 = vld [vmem:[%s249_s17 + $0x8] sm:$0xff]  ;;  %v255_v8 = vld [vmem:[%s249_s17 + $0x20] sm:$0xff]  ;;  %v257_v11 = vld [vmem:[%s249_s17 + $0x30] sm:$0xff] }
  0x19   : > { %v259_v7 = vpack.c.bf16 %v252_v6, %v251_v4  ;;  %v256_v9 = vld [vmem:[%s249_s17 + $0x28] sm:$0xff]  ;;  %v258_v12 = vld [vmem:[%s249_s17 + $0x38] sm:$0xff] }
  0x1a   : > { %v261_v10 = vpack.c.bf16 %v256_v9, %v255_v8  ;;  %v262_v13 = vpack.c.bf16 %v258_v12, %v257_v11 }
  0x1b   : > { %1556 = vmatmul.msk.bf16.vlgmr.msra.gmra.mxu3 %vm283_vm0, %v260_v5  ;;  %1555 = vmatmul.msk.bf16.vlgmr.msra.gmra.mxu0 %vm283_vm0, %v259_v7 }
  0x2b   : > { %1557 = vmatmul.msk.bf16.gmra.mxu3 %vm283_vm0, %v261_v10 }
  0x3b   : > { %1558 = vmatmul.msk.bf16.gmra.mxu3 %vm283_vm0, %v262_v13 }
  0x98   : > { %v305_v14 = vpop.f32.mrf.mxu0 }
  0x99   : > { %v306_v16 = vadd.f32 %v1817_v15, %v305_v14 }
  0x9b   : > { %v389_v18 = vpack.c.bf16 %v306_v16, %v306_v16 }
  0x9d   : > { %v405_v22 = vunpack.c.l.b16 %v389_v18 }
  0x9e   : > { %v310_v17 = vpop.f32.mrf.mxu3 }
  0x9f   : > { %v311_v21 = vadd.f32 %v1817_v15, %v310_v17 }
  0xa0   : > { %v307_v19 = vpop.f32.mrf.mxu0 }
  0xa1   : > { %v308_v20 = vadd.f32 %v1817_v15, %v307_v19  ;;  %v391_v26 = vpack.c.bf16 %v311_v21, %v311_v21 }
  0xa3   : > { %v390_v23 = vpack.c.bf16 %v308_v20, %v308_v20  ;;  %v407_v30 = vunpack.c.l.b16 %v391_v26 }
  0xa5   : > { %v406_v25 = vunpack.c.l.b16 %v390_v23 }
  0xa6   : > { %v312_v24 = vpop.f32.mrf.mxu3 }
  0xa7   : > { %v313_v27 = vadd.f32 %v1817_v15, %v312_v24  ;;  %v2127_v28 = vpack.c.b16 %v406_v25, %v405_v22 }
  0xa9   : > { %v392_v29 = vpack.c.bf16 %v313_v27, %v313_v27  ;;  %633 = vrot.lane.b32.xlu2 %v2127_v28, %s2011_s20 }
  0xab   : > { %v408_v31 = vunpack.c.l.b16 %v392_v29 }
  0xad   : > { %v2131_v32 = vpack.c.b16 %v408_v31, %v407_v30 }
  0xae   : > { %v315_v33 = vpop.f32.mrf.mxu3 }
  0xaf   : > { %419 = vrot.lane.b32.xlu1 %v2131_v32, %s2012_s26  ;;  %v316_v34 = vadd.f32 %v1817_v15, %v315_v33 }
  0xb1   : > { %572 = vrot.lane.b32.xlu2 %v2127_v28, %s2013_s28  ;;  %v393_v36 = vpack.c.bf16 %v316_v34, %v316_v34  ;;  %v2213_v34 = vld [vmem:[%s2772_s3 + $0x8] sm:$0xff]  }
  0xb3   : > { %v409_v39 = vunpack.c.l.b16 %v393_v36 }
  0xb6   : > { %v317_v35 = vpop.f32.mrf.mxu3 }
  0xb7   : > { %v318_v37 = vadd.f32 %v1817_v15, %v317_v35  ;;  %417 = vrot.lane.b32.xlu1 %v2127_v28, %s2012_s26  ;;  %v1621_v35 = vunpack.c.h.bf16 %v2213_v34 }
  0xb9   : > { %v394_v38 = vpack.c.bf16 %v318_v37, %v318_v37  ;;  %847 = vrot.lane.b32.xlu2 %v2127_v28, %s2014_s29 }
  0xbb   : > { %v410_v40 = vunpack.c.l.b16 %v394_v38  ;;  %v1679_v38 = vld [vmem:[%s2772_s3 + $0x10] sm:$0xff]  }
  0xbd   : > { %v2138_v41 = vpack.c.b16 %v410_v40, %v409_v39  ;;  %v1624_v39 = vunpack.c.l.bf16 %v1679_v38 }
  0xbe   : > { %v320_v42 = vpop.f32.mrf.mxu3 }
  0xbf   : > { %637 = vrot.lane.b32.xlu1 %v2138_v41, %s2011_s20  ;;  %v321_v43 = vadd.f32 %v1817_v15, %v320_v42 }
  0xc1   : > { %v395_v45 = vpack.c.bf16 %v321_v43, %v321_v43 }
  0xc3   : > { %v411_v48 = vunpack.c.l.b16 %v395_v45 }
  0xc6   : > { %v322_v44 = vpop.f32.mrf.mxu3 }
  0xc7   : > { %v323_v46 = vadd.f32 %v1817_v15, %v322_v44  ;;  %635 = vrot.lane.b32.xlu1 %v2131_v32, %s2011_s20  ;;  %v1625_v44 = vunpack.c.h.bf16 %v1679_v38 }
  0xc9   : > { %v396_v47 = vpack.c.bf16 %v323_v46, %v323_v46 }
  0xcb   : > { %v412_v49 = vunpack.c.l.b16 %v396_v47  ;;  %v1680_v47 = vld [vmem:[%s2772_s3 + $0x18] sm:$0xff]  }
  0xcd   : > { %v2144_v50 = vpack.c.b16 %v412_v49, %v411_v48  ;;  %v1628_v49 = vunpack.c.l.bf16 %v1680_v47 }
  0xcf   : > { %423 = vrot.lane.b32.xlu0 %v2144_v50, %s2012_s26  ;;  %625 = vrot.lane.b32.xlu1 %v2127_v28, %s2015_s9 }
  0xd7   : > { %421 = vrot.lane.b32.xlu0 %v2138_v41, %s2012_s26  ;;  %627 = vrot.lane.b32.xlu1 %v2131_v32, %s2015_s9 }
  0xdf   : > { %576 = vrot.lane.b32.xlu0 %v2138_v41, %s2013_s28  ;;  %629 = vrot.lane.b32.xlu1 %v2138_v41, %s2015_s9 }
  0xe7   : > { %574 = vrot.lane.b32.xlu0 %v2131_v32, %s2013_s28  ;;  %851 = vrot.lane.b32.xlu1 %v2138_v41, %s2014_s29 }
  0xef   : > { %1063 = vrot.lane.b32.xlu0 %v2131_v32, %s2016_s10  ;;  %1065 = vrot.lane.b32.xlu1 %v2138_v41, %s2016_s10 }
  0xf7   : > { %639 = vrot.lane.b32.xlu0 %v2144_v50, %s2011_s20  ;;  %849 = vrot.lane.b32.xlu1 %v2131_v32, %s2014_s29  ;;  %s2024_s20 = smov 16  }
  0xff   : > { %853 = vrot.lane.b32.xlu0 %v2144_v50, %s2014_s29  ;;  %1061 = vrot.lane.b32.xlu1 %v2127_v28, %s2016_s10  ;;  %s2020_s29 = smov 48  }
 0x103   : > { %v634_v14 = vpop.permute.xlu2 %633 }
 0x104   : > { %v654_v16 = vsel %vm425_vm1, %v634_v14, 0 }
 0x107   : > { %1067 = vrot.lane.b32.xlu0 %v2144_v50, %s2016_s10  ;;  %839 = vrot.lane.b32.xlu1 %v2127_v28, %s2017_s11  ;;  %s242_s10 = sand.u32 1, %s2001_s22  }
 0x10b   : > { %v573_v21 = vpop.permute.xlu2 %572 }
 0x10f   : > { %1053 = vrot.lane.b32.xlu1 %v2127_v28, %s2018_s12 }
 0x113   : > { %v848_v26 = vpop.permute.xlu2 %847 }
 0x114   : > { %v868_v27 = vsel %vm425_vm1, %v848_v26, 0  ;;  %v1681_v26 = vld [vmem:[%s2772_s3 + $0x20] sm:$0xff]  }
 0x117   : > { %578 = vrot.lane.b32.xlu1 %v2144_v50, %s2013_s28  ;;  %s1463_s28 = scalar_lea.sflag [#allocation3], %s242_s10 }
 0x11f   : > { %631 = vrot.lane.b32.xlu1 %v2144_v50, %s2015_s9 }
 0x121   : > { %v420_v51 = vpop.permute.xlu1 %419 }
 0x122   : > { %v442_v63 = vsel %vm425_vm1, %v420_v51, 0 }
 0x127   : > { %843 = vrot.lane.b32.xlu1 %v2138_v41, %s2017_s11 }
 0x129   : > { %v418_v52 = vpop.permute.xlu1 %417 }
 0x12a   : > { %v439_v2 = vsel %vm425_vm1, %v418_v52, 0 }
 0x131   : > { %v638_v53 = vpop.permute.xlu1 %637 }
 0x132   : > { %v660_v9 = vsel %vm425_vm1, %v638_v53, 0 }
 0x139   : > { %v636_v54 = vpop.permute.xlu1 %635 }
 0x13a   : > { %v657_v12 = vsel %vm425_vm1, %v636_v54, 0 }
 0x141   : > { %v424_v55 = vpop.permute.xlu0 %423  ;;  %v626_v56 = vpop.permute.xlu1 %625 }
 0x142   : > { %v448_v57 = vsel %vm425_vm1, %v424_v55, 0  ;;  %v1629_v55 = vunpack.c.h.bf16 %v1680_v47  ;;  %v1683_v47 = vld [vmem:[%s2772_s3 + $0x30] sm:$0xff]  }
 0x143   : > { %454 = vmatpush.bf16.xpose.msra.mxu1 %v448_v57 }
 0x149   : > { %v422_v58 = vpop.permute.xlu0 %421  ;;  %v628_v59 = vpop.permute.xlu1 %627 }
 0x14a   : > { %v445_v60 = vsel %vm425_vm1, %v422_v58, 0 }
 0x14b   : > { %455 = vmatpush.bf16.xpose.msra.mxu1 %v445_v60 }
 0x151   : > { %v577_v61 = vpop.permute.xlu0 %576  ;;  %v630_v62 = vpop.permute.xlu1 %629 }
 0x153   : > { %456 = vmatpush.bf16.xpose.msra.mxu1 %v442_v63 }
 0x159   : > { %v575_v0 = vpop.permute.xlu0 %574  ;;  %v852_v1 = vpop.permute.xlu1 %851 }
 0x15a   : > { %v874_v24 = vsel %vm425_vm1, %v852_v1, 0 }
 0x15b   : > { %457 = vmatpush.bf16.xpose.msra.mxu1 %v439_v2 }
 0x161   : > { %v1064_v3 = vpop.permute.xlu0 %1063  ;;  %v1066_v4 = vpop.permute.xlu1 %1065 }
 0x162   : > { %1559 = vmatmul.msk.bf16.vlgmr.msra.gmra.mxu1 %vm425_vm1, %v2127_v28  ;;  %v1088_v19 = vsel %vm425_vm1, %v1066_v4, 0  ;;  %v1085_v20 = vsel %vm425_vm1, %v1064_v3, 0 }
 0x169   : > { %v640_v5 = vpop.permute.xlu0 %639  ;;  %v850_v6 = vpop.permute.xlu1 %849 }
 0x16a   : > { %v663_v7 = vsel %vm425_vm1, %v640_v5, 0  ;;  %v871_v25 = vsel %vm425_vm1, %v850_v6, 0 }
 0x16b   : > { %669 = vmatpush.bf16.xpose.msrb.mxu3 %v663_v7 }
 0x171   : > { %v1062_v8 = vpop.permute.xlu1 %1061  ;;  %v854_v10 = vpop.permute.xlu0 %853 }
 0x172   : > { %1560 = vmatmul.msk.bf16.gmra.mxu1 %vm425_vm1, %v2131_v32  ;;  %v877_v22 = vsel %vm425_vm1, %v854_v10, 0  ;;  %v1082_v23 = vsel %vm425_vm1, %v1062_v8, 0 }
 0x173   : > { %670 = vmatpush.bf16.xpose.msrb.mxu3 %v660_v9 }
 0x179   : > { %v2183_v11 = vpop.permute.xlu1 %839  ;;  %v1068_v13 = vpop.permute.xlu0 %1067 }
 0x17a   : > { %v1091_v17 = vsel %vm425_vm1, %v1068_v13, 0 }
 0x17b   : > { %671 = vmatpush.bf16.xpose.msrb.mxu3 %v657_v12 }
 0x181   : > { %v1054_v15 = vpop.permute.xlu1 %1053 }
 0x182   : > { %1561 = vmatmul.msk.bf16.gmra.mxu1 %vm425_vm1, %v2138_v41 }
 0x183   : > { %672 = vmatpush.bf16.xpose.msrb.mxu3 %v654_v16 }
 0x189   : > { %v579_v18 = vpop.permute.xlu1 %578 }
 0x18a   : > { %600 = vmatpush.bf16.msrb.mxu0 %v579_v18  ;;  %1695 = vmatpush.bf16.msrb.mxu1 %v579_v18 }
 0x18b   : > { %1097 = vmatpush.bf16.xpose.msra.mxu3 %v1091_v17  ;;  %1696 = vmatpush.bf16.msra.mxu2 %v579_v18 }
 0x18c   : > { %1567 = vmatmul.msk.bf16.vlgmr.msrb.gmra.mxu3 %vm425_vm1, %v626_v56 }
 0x18e   : > { %601 = vmatpush.bf16.msrb.mxu0 %v577_v61  ;;  %1697 = vmatpush.bf16.msrb.mxu1 %v577_v61 }
 0x18f   : > { %1698 = vmatpush.bf16.msra.mxu2 %v577_v61 }
 0x191   : > { %v632_v29 = vpop.permute.xlu1 %631 }
 0x192   : > { %1562 = vmatmul.msk.bf16.gmra.mxu1 %vm425_vm1, %v2144_v50  ;;  %602 = vmatpush.bf16.msrb.mxu0 %v575_v0 }
 0x193   : > { %1098 = vmatpush.bf16.xpose.msra.mxu3 %v1088_v19  ;;  %1699 = vmatpush.bf16.msrb.mxu1 %v575_v0 }
 0x194   : > { %1700 = vmatpush.bf16.msra.mxu2 %v575_v0  ;;  %v2243_v0 = vld [vmem:[%s2772_s3 + $0x38] sm:$0xff]  }
 0x195   : > { %v1644_v1 = vunpack.c.l.bf16 %v2243_v0 }
 0x196   : > { %603 = vmatpush.bf16.msrb.mxu0 %v573_v21 }
 0x197   : > { %1701 = vmatpush.bf16.msrb.mxu1 %v573_v21 }
 0x198   : > { %1702 = vmatpush.bf16.msra.mxu2 %v573_v21 }
 0x19b   : > { %1099 = vmatpush.bf16.xpose.msra.mxu3 %v1085_v20 }
 0x19c   : > { %883 = vmatpush.bf16.xpose.msrb.mxu2 %v877_v22  ;;  %1568 = vmatmul.msk.bf16.gmra.mxu3 %vm425_vm1, %v628_v59 }
 0x1a3   : > { %1100 = vmatpush.bf16.xpose.msra.mxu3 %v1082_v23 }
 0x1a4   : > { %884 = vmatpush.bf16.xpose.msrb.mxu2 %v874_v24 }
 0x1ac   : > { %885 = vmatpush.bf16.xpose.msrb.mxu2 %v871_v25  ;;  %1569 = vmatmul.msk.bf16.gmra.mxu3 %vm425_vm1, %v630_v62 }
 0x1b4   : > { %886 = vmatpush.bf16.xpose.msrb.mxu2 %v868_v27  ;;  %v1615_v27 = vld [vmem:[%s2772_s3] sm:$0xff]  }
 0x1bc   : > { %1570 = vmatmul.msk.bf16.gmra.mxu3 %vm425_vm1, %v632_v29  ;;  %v1632_v29 = vunpack.c.l.bf16 %v1681_v26 }
 0x1cc   : > { %1583 = vmatmul.msk.bf16.vlgmr.msra.gmra.mxu3 %vm425_vm1, %v1054_v15 }
 0x1df   : > { %v2204_v30 = vpop.f32.mrf.mxu1 }
 0x1e7   : > { %v2206_v31 = vpop.f32.mrf.mxu1 }
 0x1ef   : > { %v2208_v33 = vpop.f32.mrf.mxu1 }
 0x1f7   : > { %v466_v36 = vpop.f32.mrf.mxu1 }
 0x1f8   : > { %v2216_v37 = vadd.f32 %v1621_v35, %v466_v36  ;;  %v1616_v35 = vunpack.c.l.bf16 %v1615_v27 }
 0x1fa   : > { %v2280_v38 = vadd.f32 %v1616_v35, %v2204_v30 }
 0x1ff   : > { %v469_v40 = vpop.f32.mrf.mxu1 }
 0x200   : > { %v470_v42 = vadd.f32 %v1624_v39, %v469_v40  ;;  %v1682_v39 = vld [vmem:[%s2772_s3 + $0x28] sm:$0xff]  }
 0x201   : > { %v1637_v40 = vunpack.c.h.bf16 %v1682_v39 }
 0x202   : > { %v492_v43 = vsel %vm479_vm2, %v470_v42, -inf }
 0x203   : > { %493 = vmax.xlane.f32.xlu2 %v492_v43  ;;  %v1633_v43 = vunpack.c.h.bf16 %v1681_v26 }
 0x207   : > { %v471_v45 = vpop.f32.mrf.mxu1 }
 0x208   : > { %v472_v46 = vadd.f32 %v1625_v44, %v471_v45  ;;  %v480_v44 = vsel %vm479_vm2, %v2280_v38, -inf }
 0x20a   : > { %v495_v48 = vsel %vm479_vm2, %v472_v46, -inf }
 0x20b   : > { %496 = vmax.xlane.f32.xlu2 %v495_v48 }
 0x20f   : > { %v674_v51 = vpop.f32.mrf.mxu3  ;;  %v474_v52 = vpop.f32.mrf.mxu1 }
 0x210   : > { %v475_v53 = vadd.f32 %v1628_v49, %v474_v52  ;;  %v2277_v36 = vadd.f32 %v1632_v29, %v674_v51  ;;  %v1640_v51 = vunpack.c.l.bf16 %v1683_v47 }
 0x212   : > { %v498_v54 = vsel %vm479_vm2, %v475_v53, -inf }
 0x213   : > { %499 = vmax.xlane.f32.xlu2 %v498_v54 }
 0x217   : > { %v2227_v56 = vpop.f32.mrf.mxu3  ;;  %v476_v57 = vpop.f32.mrf.mxu1 }
 0x218   : > { %v477_v58 = vadd.f32 %v1629_v55, %v476_v57  ;;  %v2292_v30 = vadd.f32 %v1633_v43, %v2227_v56  ;;  %v1641_v57 = vunpack.c.h.bf16 %v1683_v47 }
 0x21a   : > { %v501_v59 = vsel %vm479_vm2, %v477_v58, -inf  ;;  %v697_v52 = vsel %vm479_vm2, %v2292_v30, -inf }
 0x21b   : > { %502 = vmax.xlane.f32.xlu0 %v501_v59 }
 0x21f   : > { %v2230_v60 = vpop.f32.mrf.mxu3 }
 0x227   : > { %v681_v61 = vpop.f32.mrf.mxu3 }
 0x228   : > { %v2289_v45 = vadd.f32 %v1637_v40, %v681_v61  ;;  %v1620_v61 = vunpack.c.l.bf16 %v2213_v34 }
 0x22a   : > { %v703_v48 = vsel %vm479_vm2, %v2289_v45, -inf }
 0x22b   : > { %1055 = vrot.lane.b32.xlu2 %v2131_v32, %s2018_s12 }
 0x22f   : > { %v2234_v62 = vpop.f32.mrf.mxu3  ;;  %841 = vrot.lane.b32.xlu0 %v2131_v32, %s2017_s11 }
 0x230   : > { %v2307_v55 = vadd.f32 %v1640_v51, %v2234_v62 }
 0x237   : > { %v2238_v63 = vpop.f32.mrf.mxu3 }
 0x238   : > { %v2317_v59 = vadd.f32 %v1641_v57, %v2238_v63 }
 0x23a   : > { %v709_v62 = vsel %vm479_vm2, %v2317_v59, -inf }
 0x23f   : > { %v689_v2 = vpop.f32.mrf.mxu3 }
 0x240   : > { %v2246_v3 = vadd.f32 %v1644_v1, %v689_v2  ;;  %v1645_v1 = vunpack.c.h.bf16 %v2243_v0 }
 0x242   : > { %v712_v51 = vsel %vm479_vm2, %v2246_v3, -inf }
 0x276   : > { %v494_v4 = vpop.xlane.xlu2 %493 }
 0x277   : > { %v508_v5 = vsub.f32 %v470_v42, %v494_v4  ;;  %v694_v42 = vsel %vm479_vm2, %v2277_v36, -inf  ;;  %v691_v4 = vpop.f32.mrf.mxu3 }
 0x279   : > { %v520_v6 = vmul.f32 1.442695, %v508_v5  ;;  %v844_v5 = vpop.permute.xlu1 %843 }
 0x27b   : > { %1819 = vpow2.f32 %v520_v6  ;;  %v2328_v6 = vadd.f32 %v1645_v1, %v691_v4 }
 0x27d   : > { %v715_v34 = vsel %vm479_vm2, %v2328_v6, -inf }
 0x27e   : > { %v497_v7 = vpop.xlane.xlu2 %496 }
 0x27f   : > { %v509_v8 = vsub.f32 %v472_v46, %v497_v7  ;;  %v1617_v46 = vunpack.c.h.bf16 %v1615_v27 }
 0x281   : > { %v2248_v9 = vpop.eup %1819  ;;  %v522_v10 = vmul.f32 1.442695, %v509_v8  ;;  %v2300_v49 = vadd.f32 %v1617_v46, %v2206_v31  ;;  %v706_v31 = vsel %vm479_vm2, %v2307_v55, -inf }
 0x282   : > { %v540_v12 = vsel %vm479_vm2, %v2248_v9, 0.0 }
 0x283   : > { %1821 = vpow2.f32 %v522_v10  ;;  %541 = vadd.xlane.f32.xlu2 %v540_v12  ;;  %v483_v54 = vsel %vm479_vm2, %v2300_v49, -inf }
 0x286   : > { %v500_v13 = vpop.xlane.xlu2 %499 }
 0x287   : > { %v510_v14 = vsub.f32 %v475_v53, %v500_v13  ;;  %v1636_v53 = vunpack.c.l.bf16 %v1682_v39 }
 0x289   : > { %v2252_v15 = vpop.eup %1821  ;;  %v524_v16 = vmul.f32 1.442695, %v510_v14  ;;  %v2310_v56 = vadd.f32 %v1636_v53, %v2230_v60  ;;  %v2323_v60 = vadd.f32 %v1620_v61, %v2208_v33  ;;  %v1689_v61 = vld [vmem:[%s2772_s3 + $0x60] sm:$0xff]  }
 0x28a   : > { %v543_v17 = vsel %vm479_vm2, %v2252_v15, 0.0 }
 0x28b   : > { %1823 = vpow2.f32 %v524_v16  ;;  %544 = vadd.xlane.f32.xlu1 %v543_v17  ;;  %v486_v2 = vsel %vm479_vm2, %v2323_v60, -inf }
 0x28e   : > { %v503_v18 = vpop.xlane.xlu0 %502  ;;  %v1056_v19 = vpop.permute.xlu2 %1055 }
 0x28f   : > { %v511_v20 = vsub.f32 %v477_v58, %v503_v18  ;;  %1584 = vmatmul.msk.bf16.gmra.mxu3 %vm425_vm1, %v1056_v19  ;;  %v700_v58 = vsel %vm479_vm2, %v2310_v56, -inf }
 0x291   : > { %v2257_v21 = vpop.eup %1823  ;;  %v526_v22 = vmul.f32 1.442695, %v511_v20 }
 0x292   : > { %v546_v23 = vsel %vm479_vm2, %v2257_v21, 0.0 }
 0x293   : > { %1825 = vpow2.f32 %v526_v22  ;;  %547 = vadd.xlane.f32.xlu0 %v546_v23 }
 0x299   : > { %v2261_v24 = vpop.eup %1825 }
 0x29a   : > { %v549_v25 = vsel %vm479_vm2, %v2261_v24, 0.0 }
 0x29b   : > { %550 = vadd.xlane.f32.xlu2 %v549_v25 }
 0x2a1   : > { %v842_v33 = vpop.permute.xlu0 %841 }
 0x2a4   : > { %1059 = vrot.lane.b32.xlu1 %v2144_v50, %s2018_s12 }
 0x2a7   : > { %1057 = vrot.lane.b32.xlu0 %v2138_v41, %s2018_s12  ;;  %s2021_s12 = smov 40  }
 0x2b3   : > { %845 = vrot.lane.b32.xlu2 %v2144_v50, %s2017_s11  ;;  %s1967_s11 = scalar_lea.hbm %s2775_s6, 128 }
 0x2ce   : > { %695 = vmax.xlane.f32.xlu1 %v694_v42 }
 0x2d1   : > { %481 = vmax.xlane.f32.xlu0 %v480_v44  ;;  %v489_v44 = vsel %vm479_vm2, %v2216_v37, -inf }
 0x2d6   : > { %704 = vmax.xlane.f32.xlu1 %v703_v48 }
 0x2d9   : > { %698 = vmax.xlane.f32.xlu0 %v697_v52 }
 0x2dc   : > { %484 = vmax.xlane.f32.xlu2 %v483_v54 }
 0x2e1   : > { %707 = vmax.xlane.f32.xlu0 %v706_v31 }
 0x2e4   : > { %701 = vmax.xlane.f32.xlu2 %v700_v58 }
 0x2ec   : > { %710 = vmax.xlane.f32.xlu2 %v709_v62  ;;  %v1664_v62 = vunpack.c.l.bf16 %v1689_v61 }
 0x2f4   : > { %487 = vmax.xlane.f32.xlu2 %v486_v2 }
 0x2f6   : > { %v542_v63 = vpop.xlane.xlu2 %541 }
 0x2f7   : > { %1827 = vrcp.f32 %v542_v63 }
 0x2fc   : > { %716 = vmax.xlane.f32.xlu2 %v715_v34 }
 0x2fd   : > { %v1828_v8 = vpop.eup %1827 }
 0x2fe   : > { %v545_v7 = vpop.xlane.xlu1 %544  ;;  %v564_v0 = vmul.f32 %v1828_v8, %v2248_v9 }
 0x2ff   : > { %1829 = vrcp.f32 %v545_v7 }
 0x305   : > { %v1830_v10 = vpop.eup %1829 }
 0x306   : > { %v565_v12 = vmul.f32 %v1830_v10, %v2252_v15  ;;  %v548_v14 = vpop.xlane.xlu0 %547 }
 0x307   : > { %1831 = vrcp.f32 %v548_v14 }
 0x308   : > { %v570_v13 = vpack.c.bf16 %v565_v12, %v564_v0 }
 0x30a   : > { %1565 = vmatmul.msk.bf16.vlgmr.msra.gmra.mxu2 %vm479_vm2, %v570_v13 }
 0x30d   : > { %v1832_v17 = vpop.eup %1831 }
 0x30e   : > { %v551_v16 = vpop.xlane.xlu2 %550  ;;  %v566_v19 = vmul.f32 %v1832_v17, %v2257_v21 }
 0x30f   : > { %1833 = vrcp.f32 %v551_v16 }
 0x315   : > { %v1834_v18 = vpop.eup %1833 }
 0x316   : > { %v567_v20 = vmul.f32 %v1834_v18, %v2261_v24  ;;  %v1060_v9 = vpop.permute.xlu1 %1059  ;;  %v846_v21 = vpop.permute.xlu2 %845 }
 0x318   : > { %v571_v22 = vpack.c.bf16 %v567_v20, %v566_v19  ;;  %v1665_v20 = vunpack.c.h.bf16 %v1689_v61 }
 0x319   : > { %v1058_v23 = vpop.permute.xlu0 %1057 }
 0x31a   : > { %1566 = vmatmul.msk.bf16.gmra.mxu2 %vm479_vm2, %v571_v22  ;;  %1585 = vmatmul.msk.bf16.gmra.mxu3 %vm425_vm1, %v1058_v23  ;;  %v1691_v22 = vld [vmem:[%s2772_s3 + $0x70] sm:$0xff]  }
 0x32a   : > { %1575 = vmatmul.msk.bf16.vlgmr.msrb.gmra.mxu2 %vm425_vm1, %v2183_v11  ;;  %1586 = vmatmul.msk.bf16.gmra.mxu3 %vm425_vm1, %v1060_v9  ;;  %v1673_v9 = vunpack.c.h.bf16 %v1691_v22 }
 0x33a   : > { %1576 = vmatmul.msk.bf16.gmra.mxu2 %vm425_vm1, %v842_v33  ;;  %v1690_v33 = vld [vmem:[%s2772_s3 + $0x68] sm:$0xff]  }
 0x33b   : > { %v1669_v8 = vunpack.c.h.bf16 %v1690_v33 }
 0x341   : > { %v696_v43 = vpop.xlane.xlu1 %695 }
 0x342   : > { %v718_v47 = vsub.f32 %v2277_v36, %v696_v43  ;;  %v1102_v36 = vpop.f32.mrf.mxu3 }
 0x343   : > { %v2379_v4 = vadd.f32 %v1664_v62, %v1102_v36  ;;  %v1672_v62 = vunpack.c.l.bf16 %v1691_v22 }
 0x344   : > { %v482_v15 = vpop.xlane.xlu0 %481 }
 0x345   : > { %v504_v25 = vsub.f32 %v2280_v38, %v482_v15  ;;  %v1122_v10 = vsel %vm479_vm2, %v2379_v4, -inf }
 0x347   : > { %v512_v26 = vmul.f32 1.442695, %v504_v25 }
 0x349   : > { %1835 = vpow2.f32 %v512_v26 }
 0x34a   : > { %1577 = vmatmul.msk.bf16.gmra.mxu2 %vm425_vm1, %v844_v5  ;;  %v1104_v54 = vpop.f32.mrf.mxu3 }
 0x34c   : > { %v699_v24 = vpop.xlane.xlu0 %698 }
 0x34d   : > { %v719_v27 = vsub.f32 %v2292_v30, %v699_v24 }
 0x34f   : > { %v2346_v29 = vpop.eup %1835  ;;  %v728_v35 = vmul.f32 1.442695, %v719_v27  ;;  %v485_v39 = vpop.xlane.xlu2 %484 }
 0x350   : > { %v505_v11 = vsub.f32 %v2300_v49, %v485_v39  ;;  %v528_v40 = vsel %vm479_vm2, %v2346_v29, 0.0  ;;  %v726_v49 = vmul.f32 1.442695, %v718_v47  ;;  %v1685_v47 = vld [vmem:[%s2772_s3 + $0x40] sm:$0xff]  }
 0x351   : > { %1837 = vpow2.f32 %v728_v35  ;;  %529 = vadd.xlane.f32.xlu1 %v528_v40 }
 0x352   : > { %v514_v38 = vmul.f32 1.442695, %v505_v11  ;;  %v1107_v31 = vpop.f32.mrf.mxu3 }
 0x354   : > { %1839 = vpow2.f32 %v514_v38  ;;  %v708_v7 = vpop.xlane.xlu0 %707 }
 0x355   : > { %1841 = vpow2.f32 %v726_v49  ;;  %v722_v0 = vsub.f32 %v2307_v55, %v708_v7  ;;  %v1649_v49 = vunpack.c.h.bf16 %v1685_v47 }
 0x357   : > { %v2351_v42 = vpop.eup %1837  ;;  %v702_v57 = vpop.xlane.xlu2 %701  ;;  %v734_v16 = vmul.f32 1.442695, %v722_v0  ;;  %v1692_v0 = vld [vmem:[%s2772_s3 + $0x78] sm:$0xff]  }
 0x358   : > { %v745_v46 = vsel %vm479_vm2, %v2351_v42, 0.0  ;;  %v720_v1 = vsub.f32 %v2310_v56, %v702_v57  ;;  %v705_v56 = vpop.xlane.xlu1 %704 }
 0x359   : > { %490 = vmax.xlane.f32.xlu1 %v489_v44  ;;  %746 = vadd.xlane.f32.xlu2 %v745_v46  ;;  %v721_v19 = vsub.f32 %v2289_v45, %v705_v56  ;;  %v1668_v46 = vunpack.c.l.bf16 %v1690_v33 }
 0x35a   : > { %v2357_v30 = vpop.eup %1839  ;;  %1578 = vmatmul.msk.bf16.gmra.mxu2 %vm425_vm1, %v846_v21  ;;  %v1109_v2 = vpop.f32.mrf.mxu3  ;;  %v730_v34 = vmul.f32 1.442695, %v720_v1  ;;  %v2404_v21 = vadd.f32 %v1665_v20, %v1104_v54 }
 0x35b   : > { %v531_v48 = vsel %vm479_vm2, %v2357_v30, 0.0  ;;  %v2365_v52 = vpop.eup %1841  ;;  %v2389_v12 = vadd.f32 %v1669_v8, %v1109_v2  ;;  %v732_v25 = vmul.f32 1.442695, %v721_v19  ;;  %v2430_v36 = vadd.f32 %v1668_v46, %v1107_v31 }
 0x35c   : > { %532 = vadd.xlane.f32.xlu0 %v531_v48  ;;  %v742_v53 = vsel %vm479_vm2, %v2365_v52, 0.0  ;;  %1843 = vpow2.f32 %v730_v34  ;;  %v1125_v39 = vsel %vm479_vm2, %v2404_v21, -inf  ;;  %v1676_v19 = vunpack.c.l.bf16 %v1692_v0 }
 0x35d   : > { %v1131_v55 = vsel %vm479_vm2, %v2389_v12, -inf  ;;  %1845 = vpow2.f32 %v734_v16 }
 0x35e   : > { %1847 = vpow2.f32 %v732_v25  ;;  %v1648_v25 = vunpack.c.l.bf16 %v1685_v47 }
 0x35f   : > { %v711_v5 = vpop.xlane.xlu2 %710 }
 0x360   : > { %v723_v44 = vsub.f32 %v2317_v59, %v711_v5  ;;  %v1128_v59 = vsel %vm479_vm2, %v2430_v36, -inf }
 0x362   : > { %v2393_v18 = vpop.eup %1843 }
 0x363   : > { %v748_v15 = vsel %vm479_vm2, %v2393_v18, 0.0  ;;  %v2410_v35 = vpop.eup %1845 }
 0x364   : > { %713 = vmax.xlane.f32.xlu0 %v712_v51  ;;  %v754_v11 = vsel %vm479_vm2, %v2410_v35, 0.0  ;;  %v2418_v38 = vpop.eup %1847 }
 0x365   : > { %v751_v48 = vsel %vm479_vm2, %v2418_v38, 0.0 }
 0x367   : > { %v488_v17 = vpop.xlane.xlu2 %487 }
 0x368   : > { %v506_v23 = vsub.f32 %v2323_v60, %v488_v17 }
 0x36a   : > { %v516_v24 = vmul.f32 1.442695, %v506_v23 }
 0x36c   : > { %743 = vadd.xlane.f32.xlu0 %v742_v53  ;;  %1849 = vpow2.f32 %v516_v24  ;;  %v736_v53 = vmul.f32 1.442695, %v723_v44 }
 0x36e   : > { %1851 = vpow2.f32 %v736_v53 }
 0x371   : > { %788 = vrot.lane.b32.xlu2 %v2131_v32, %s2019_s14 }
 0x372   : > { %792 = vrot.lane.b32.xlu1 %v2144_v50, %s2019_s14  ;;  %v2420_v43 = vpop.eup %1849 }
 0x373   : > { %v534_v51 = vsel %vm479_vm2, %v2420_v43, 0.0 }
 0x374   : > { %v2436_v61 = vpop.eup %1851 }
 0x375   : > { %v757_v1 = vsel %vm479_vm2, %v2436_v61, 0.0 }
 0x37a   : > { %786 = vrot.lane.b32.xlu1 %v2127_v28, %s2019_s14 }
 0x380   : > { %790 = vrot.lane.b32.xlu0 %v2138_v41, %s2019_s14 }
 0x38d   : > { %v2373_v58 = vpop.f32.mrf.mxu2 }
 0x395   : > { %v2381_v63 = vpop.f32.mrf.mxu2 }
 0x39a   : > { %1123 = vmax.xlane.f32.xlu2 %v1122_v10 }
 0x39d   : > { %v2391_v13 = vpop.f32.mrf.mxu2  ;;  %v1112_v14 = vpop.f32.mrf.mxu3 }
 0x39e   : > { %v2440_v5 = vadd.f32 %v1672_v62, %v1112_v14 }
 0x3a0   : > { %v1134_v31 = vsel %vm479_vm2, %v2440_v5, -inf }
 0x3a2   : > { %1132 = vmax.xlane.f32.xlu2 %v1131_v55 }
 0x3a4   : > { %749 = vadd.xlane.f32.xlu1 %v748_v15 }
 0x3a5   : > { %v2406_v45 = vpop.f32.mrf.mxu2  ;;  %v1114_v26 = vpop.f32.mrf.mxu3 }
 0x3a6   : > { %v2408_v27 = vadd.f32 %v1673_v9, %v1114_v26  ;;  %v1677_v26 = vunpack.c.h.bf16 %v1692_v0 }
 0x3a8   : > { %v1137_v60 = vsel %vm479_vm2, %v2408_v27, -inf }
 0x3aa   : > { %1138 = vmax.xlane.f32.xlu2 %v1137_v60  ;;  %1126 = vmax.xlane.f32.xlu0 %v1125_v39 }
 0x3ac   : > { %755 = vadd.xlane.f32.xlu1 %v754_v11 }
 0x3ad   : > { %v888_v40 = vpop.f32.mrf.mxu2  ;;  %v1117_v55 = vpop.f32.mrf.mxu3 }
 0x3ae   : > { %v2458_v15 = vadd.f32 %v1676_v19, %v1117_v55  ;;  %v2466_v60 = vadd.f32 %v1648_v25, %v888_v40 }
 0x3b0   : > { %v908_v47 = vsel %vm479_vm2, %v2466_v60, -inf }
 0x3b2   : > { %752 = vadd.xlane.f32.xlu0 %v751_v48 }
 0x3b4   : > { %535 = vadd.xlane.f32.xlu1 %v534_v51 }
 0x3b5   : > { %v890_v54 = vpop.f32.mrf.mxu2  ;;  %v1119_v39 = vpop.f32.mrf.mxu3 }
 0x3b6   : > { %v2432_v57 = vadd.f32 %v1649_v49, %v890_v54  ;;  %v2469_v46 = vadd.f32 %v1677_v26, %v1119_v39  ;;  %v1688_v26 = vld [vmem:[%s2772_s3 + $0x58] sm:$0xff]  }
 0x3b8   : > { %v1143_v51 = vsel %vm479_vm2, %v2469_v46, -inf }
 0x3ba   : > { %1129 = vmax.xlane.f32.xlu0 %v1128_v59 }
 0x3c2   : > { %758 = vadd.xlane.f32.xlu0 %v757_v1 }
 0x3c4   : > { %v530_v2 = vpop.xlane.xlu1 %529 }
 0x3c5   : > { %1853 = vrcp.f32 %v530_v2  ;;  %v893_v2 = vpop.f32.mrf.mxu2 }
 0x3ca   : > { %1135 = vmax.xlane.f32.xlu0 %v1134_v31 }
 0x3cb   : > { %v1854_v10 = vpop.eup %1853 }
 0x3cc   : > { %v491_v34 = vpop.xlane.xlu1 %490  ;;  %v560_v16 = vmul.f32 %v1854_v10, %v2346_v29  ;;  %v1140_v29 = vsel %vm479_vm2, %v2458_v15, -inf }
 0x3cd   : > { %v507_v7 = vsub.f32 %v2216_v37, %v491_v34  ;;  %1006 = vrot.lane.b32.xlu1 %v2144_v50, %s2020_s29 }
 0x3cf   : > { %v518_v33 = vmul.f32 1.442695, %v507_v7  ;;  %v533_v8 = vpop.xlane.xlu0 %532 }
 0x3d0   : > { %1855 = vrcp.f32 %v533_v8  ;;  %v2484_v8 = vpop.f32.mrf.mxu2 }
 0x3d1   : > { %1857 = vpow2.f32 %v518_v33 }
 0x3d6   : > { %v1856_v56 = vpop.eup %1855 }
 0x3d7   : > { %v2450_v14 = vpop.eup %1857  ;;  %v561_v37 = vmul.f32 %v1856_v56, %v2357_v30  ;;  %v714_v17 = vpop.xlane.xlu0 %713 }
 0x3d8   : > { %v724_v20 = vsub.f32 %v2246_v3, %v714_v17  ;;  %v537_v22 = vsel %vm479_vm2, %v2450_v14, 0.0  ;;  %v717_v3 = vpop.xlane.xlu2 %716  ;;  %v898_v10 = vpop.f32.mrf.mxu2 }
 0x3d9   : > { %538 = vadd.xlane.f32.xlu0 %v537_v22  ;;  %v568_v23 = vpack.c.bf16 %v561_v37, %v560_v16  ;;  %v725_v44 = vsub.f32 %v2328_v6, %v717_v3 }
 0x3da   : > { %v738_v9 = vmul.f32 1.442695, %v724_v20  ;;  %v2508_v20 = vld [vmem:[%s2772_s3 + $0x50] sm:$0xff]  }
 0x3db   : > { %1563 = vmatmul.msk.bf16.vlgmr.msrb.gmra.mxu0 %vm479_vm2, %v568_v23  ;;  %v740_v48 = vmul.f32 1.442695, %v725_v44  ;;  %v1660_v44 = vunpack.c.l.bf16 %v1688_v26 }
 0x3dc   : > { %1859 = vpow2.f32 %v738_v9 }
 0x3dd   : > { %1861 = vpow2.f32 %v740_v48 }
 0x3df   : > { %v744_v49 = vpop.xlane.xlu0 %743 }
 0x3e0   : > { %v747_v53 = vpop.xlane.xlu2 %746  ;;  %1863 = vrcp.f32 %v744_v49 }
 0x3e1   : > { %1141 = vmax.xlane.f32.xlu0 %v1140_v29  ;;  %1865 = vrcp.f32 %v747_v53 }
 0x3e2   : > { %v2462_v30 = vpop.eup %1859 }
 0x3e3   : > { %v760_v24 = vsel %vm479_vm2, %v2462_v30, 0.0  ;;  %v2475_v54 = vpop.eup %1861 }
 0x3e4   : > { %761 = vadd.xlane.f32.xlu2 %v760_v24  ;;  %v793_v11 = vpop.permute.xlu1 %792  ;;  %v763_v62 = vsel %vm479_vm2, %v2475_v54, 0.0  ;;  %v1661_v24 = vunpack.c.h.bf16 %v1688_v26 }
 0x3e5   : > { %814 = vmatpush.bf16.msra.mxu0 %v793_v11 }
 0x3e6   : > { %v1864_v6 = vpop.eup %1863 }
 0x3e7   : > { %v1866_v1 = vpop.eup %1865  ;;  %v774_v31 = vmul.f32 %v1864_v6, %v2365_v52  ;;  %v2494_v52 = vpop.f32.mrf.mxu2 }
 0x3e8   : > { %v789_v59 = vpop.permute.xlu2 %788  ;;  %v775_v34 = vmul.f32 %v1866_v1, %v2351_v42  ;;  %v2492_v42 = vld [vmem:[%s2772_s3 + $0x48] sm:$0xff]  }
 0x3e9   : > { %909 = vmax.xlane.f32.xlu0 %v908_v47  ;;  %v1652_v37 = vunpack.c.l.bf16 %v2492_v42 }
 0x3ea   : > { %v782_v33 = vpack.c.bf16 %v775_v34, %v774_v31 }
 0x3eb   : > { %v2503_v17 = vadd.f32 %v1652_v37, %v893_v2 }
 0x3ec   : > { %1144 = vmax.xlane.f32.xlu2 %v1143_v51  ;;  %v787_v7 = vpop.permute.xlu1 %786 }
 0x3ed   : > { %v914_v25 = vsel %vm479_vm2, %v2503_v17, -inf }
 0x3ef   : > { %v903_v55 = vpop.f32.mrf.mxu2 }
 0x3f2   : > { %v791_v40 = vpop.permute.xlu0 %790 }
 0x3f3   : > { %815 = vmatpush.bf16.msra.mxu0 %v791_v40 }
 0x3f7   : > { %764 = vadd.xlane.f32.xlu1 %v763_v62  ;;  %816 = vmatpush.bf16.msra.mxu0 %v789_v59  ;;  %v905_v47 = vpop.f32.mrf.mxu2  ;;  %v2529_v62 = vadd.f32 %v1660_v44, %v903_v55 }
 0x3f8   : > { %v2525_v51 = vadd.f32 %v1661_v24, %v905_v47 }
 0x3fb   : > { %817 = vmatpush.bf16.msra.mxu0 %v787_v7 }
 0x3fd   : > { %1220 = vrot.lane.b32.xlu0 %v2144_v50, %s2021_s12 }
 0x3fe   : > { %1571 = vmatmul.msk.bf16.vlgmr.msra.gmra.mxu0 %vm479_vm2, %v782_v33  ;;  %v929_v33 = vsel %vm479_vm2, %v2525_v51, -inf }
 0x40d   : > { %v1124_v0 = vpop.xlane.xlu2 %1123 }
 0x40e   : > { %v1146_v56 = vsub.f32 %v2379_v4, %v1124_v0 }
 0x410   : > { %v1154_v16 = vmul.f32 1.442695, %v1146_v56  ;;  %1004 = vrot.lane.b32.xlu1 %v2138_v41, %s2020_s29 }
 0x412   : > { %1867 = vpow2.f32 %v1154_v16 }
 0x415   : > { %v1133_v1 = vpop.xlane.xlu2 %1132 }
 0x416   : > { %v1149_v7 = vsub.f32 %v2389_v12, %v1133_v1 }
 0x417   : > { %v750_v9 = vpop.xlane.xlu1 %749 }
 0x418   : > { %v2496_v50 = vpop.eup %1867  ;;  %1218 = vrot.lane.b32.xlu1 %v2138_v41, %s2021_s12  ;;  %v1656_v41 = vunpack.c.l.bf16 %v2508_v20 }
 0x419   : > { %v1170_v4 = vsel %vm479_vm2, %v2496_v50, 0.0 }
 0x41a   : > { %1171 = vadd.xlane.f32.xlu2 %v1170_v4  ;;  %v2514_v29 = vadd.f32 %v1656_v41, %v898_v10  ;;  %v911_v41 = vsel %vm479_vm2, %v2432_v57, -inf }
 0x41c   : > { %v920_v39 = vsel %vm479_vm2, %v2514_v29, -inf }
 0x41d   : > { %v1127_v19 = vpop.xlane.xlu0 %1126 }
 0x41e   : > { %v1147_v22 = vsub.f32 %v2404_v21, %v1127_v19 }
 0x41f   : > { %v756_v53 = vpop.xlane.xlu1 %755 }
 0x420   : > { %v1156_v23 = vmul.f32 1.442695, %v1147_v22 }
 0x422   : > { %915 = vmax.xlane.f32.xlu2 %v914_v25  ;;  %1869 = vpow2.f32 %v1156_v23  ;;  %v1653_v23 = vunpack.c.h.bf16 %v2492_v42  ;;  %v1657_v25 = vunpack.c.h.bf16 %v2508_v20 }
 0x423   : > { %1871 = vrcp.f32 %v750_v9 }
 0x424   : > { %v2561_v26 = vadd.f32 %v1657_v25, %v2494_v52 }
 0x425   : > { %v753_v3 = vpop.xlane.xlu0 %752 }
 0x426   : > { %1873 = vrcp.f32 %v753_v3 }
 0x428   : > { %v2519_v21 = vpop.eup %1869 }
 0x429   : > { %v1872_v11 = vpop.eup %1871  ;;  %v1173_v48 = vsel %vm479_vm2, %v2519_v21, 0.0 }
 0x42a   : > { %921 = vmax.xlane.f32.xlu2 %v920_v39  ;;  %1174 = vadd.xlane.f32.xlu0 %v1173_v48  ;;  %v776_v6 = vmul.f32 %v1872_v11, %v2393_v18  ;;  %v926_v18 = vsel %vm479_vm2, %v2529_v62, -inf  ;;  %v923_v39 = vsel %vm479_vm2, %v2561_v26, -inf }
 0x42c   : > { %v1874_v49 = vpop.eup %1873 }
 0x42d   : > { %v1130_v40 = vpop.xlane.xlu0 %1129  ;;  %v777_v59 = vmul.f32 %v1874_v49, %v2418_v38  ;;  %v1160_v38 = vmul.f32 1.442695, %v1149_v7  ;;  %v1139_v49 = vpop.xlane.xlu2 %1138 }
 0x42e   : > { %v1148_v2 = vsub.f32 %v2430_v36, %v1130_v40  ;;  %v536_v36 = vpop.xlane.xlu1 %535 }
 0x42f   : > { %v783_v31 = vpack.c.bf16 %v777_v59, %v776_v6 }
 0x430   : > { %v1158_v34 = vmul.f32 1.442695, %v1148_v2 }
 0x431   : > { %1572 = vmatmul.msk.bf16.gmra.mxu0 %vm479_vm2, %v783_v31 }
 0x432   : > { %1875 = vpow2.f32 %v1158_v34  ;;  %930 = vmax.xlane.f32.xlu2 %v929_v33  ;;  %927 = vmax.xlane.f32.xlu0 %v926_v18 }
 0x433   : > { %1877 = vrcp.f32 %v756_v53 }
 0x435   : > { %v759_v10 = vpop.xlane.xlu0 %758 }
 0x436   : > { %1879 = vrcp.f32 %v759_v10 }
 0x437   : > { %1881 = vpow2.f32 %v1160_v38 }
 0x438   : > { %v2538_v0 = vpop.eup %1875  ;;  %1883 = vrcp.f32 %v536_v36 }
 0x439   : > { %v1176_v12 = vsel %vm479_vm2, %v2538_v0, 0.0  ;;  %v1878_v56 = vpop.eup %1877 }
 0x43a   : > { %1177 = vadd.xlane.f32.xlu0 %v1176_v12  ;;  %v778_v37 = vmul.f32 %v1878_v56, %v2410_v35 }
 0x43c   : > { %v1880_v16 = vpop.eup %1879 }
 0x43d   : > { %v779_v4 = vmul.f32 %v1880_v16, %v2436_v61  ;;  %v2544_v19 = vpop.eup %1881  ;;  %v2552_v35 = vpop.xlane.xlu0 %1135  ;;  %v2555_v61 = vadd.f32 %v1653_v23, %v2484_v8 }
 0x43e   : > { %v1179_v9 = vsel %vm479_vm2, %v2544_v19, 0.0  ;;  %v1884_v24 = vpop.eup %1883 }
 0x43f   : > { %v1007_v22 = vpop.permute.xlu1 %1006  ;;  %v784_v55 = vpack.c.bf16 %v779_v4, %v778_v37  ;;  %v917_v42 = vsel %vm479_vm2, %v2555_v61, -inf  ;;  %v562_v8 = vmul.f32 %v1884_v24, %v2420_v43 }
 0x440   : > { %1028 = vmatpush.bf16.msra.mxu1 %v1007_v22 }
 0x441   : > { %1573 = vmatmul.msk.bf16.gmra.mxu0 %vm479_vm2, %v784_v55 }
 0x442   : > { %912 = vmax.xlane.f32.xlu1 %v911_v41  ;;  %1180 = vadd.xlane.f32.xlu0 %v1179_v9 }
 0x44a   : > { %918 = vmax.xlane.f32.xlu1 %v917_v42 }
 0x44c   : > { %v539_v3 = vpop.xlane.xlu0 %538 }
 0x44d   : > { %1885 = vrcp.f32 %v539_v3 }
 0x452   : > { %924 = vmax.xlane.f32.xlu1 %v923_v39 }
 0x453   : > { %v1886_v11 = vpop.eup %1885 }
 0x454   : > { %v563_v20 = vmul.f32 %v1886_v11, %v2450_v14  ;;  %v2567_v44 = vpop.xlane.xlu0 %1141  ;;  %v1151_v11 = vsub.f32 %v2408_v27, %v1139_v49 }
 0x456   : > { %v569_v47 = vpack.c.bf16 %v563_v20, %v562_v8  ;;  %v1164_v20 = vmul.f32 1.442695, %v1151_v11 }
 0x457   : > { %v762_v40 = vpop.xlane.xlu2 %761 }
 0x458   : > { %1564 = vmatmul.msk.bf16.vlgmr.msrb.gmra.mxu1 %vm479_vm2, %v569_v47 }
 0x45c   : > { %v910_v48 = vpop.xlane.xlu0 %909 }
 0x45d   : > { %v932_v52 = vsub.f32 %v2466_v60, %v910_v48 }
 0x45f   : > { %v940_v53 = vmul.f32 1.442695, %v932_v52  ;;  %v1145_v33 = vpop.xlane.xlu2 %1144 }
 0x460   : > { %v1153_v39 = vsub.f32 %v2469_v46, %v1145_v33  ;;  %v1152_v46 = vsub.f32 %v2458_v15, %v2567_v44 }
 0x461   : > { %1887 = vpow2.f32 %v940_v53 }
 0x462   : > { %1889 = vrcp.f32 %v762_v40  ;;  %v1168_v8 = vmul.f32 1.442695, %v1153_v39  ;;  %v1166_v52 = vmul.f32 1.442695, %v1152_v46 }
 0x467   : > { %v2571_v6 = vpop.eup %1887 }
 0x468   : > { %v956_v59 = vsel %vm479_vm2, %v2571_v6, 0.0  ;;  %v1890_v14 = vpop.eup %1889 }
 0x469   : > { %957 = vadd.xlane.f32.xlu2 %v956_v59  ;;  %v780_v2 = vmul.f32 %v1890_v14, %v2462_v30 }
 0x46a   : > { %v765_v43 = vpop.xlane.xlu1 %764 }
 0x46b   : > { %1891 = vrcp.f32 %v765_v43  ;;  %1216 = vrot.lane.b32.xlu1 %v2131_v32, %s2021_s12 }
 0x46f   : > { %v1221_v1 = vpop.permute.xlu0 %1220 }
 0x470   : > { %1242 = vmatpush.bf16.msrb.mxu0 %v1221_v1 }
 0x471   : > { %v1892_v60 = vpop.eup %1891 }
 0x472   : > { %v781_v31 = vmul.f32 %v1892_v60, %v2475_v54 }
 0x473   : > { %1000 = vrot.lane.b32.xlu1 %v2127_v28, %s2020_s29 }
 0x474   : > { %v785_v34 = vpack.c.bf16 %v781_v31, %v780_v2  ;;  %v2631_v2 = vpop.f32.mrf.mxu0 }
 0x476   : > { %1574 = vmatmul.msk.bf16.gmra.mxu0 %vm479_vm2, %v785_v34 }
 0x47b   : > { %1214 = vrot.lane.b32.xlu1 %v2127_v28, %s2021_s12  ;;  %s1544_s12 = sshll.u32 %s242_s10, 6 }
 0x47c   : > { %s244_s14 = scalar_lea.vmem [#allocation2], %s1544_s12 }
 0x482   : > { %v1005_v7 = vpop.permute.xlu1 %1004 }
 0x483   : > { %1029 = vmatpush.bf16.msra.mxu1 %v1005_v7 }
 0x48a   : > { %v1219_v18 = vpop.permute.xlu1 %1218 }
 0x48b   : > { %1243 = vmatpush.bf16.msrb.mxu0 %v1219_v18 }
 0x48d   : > { %v1172_v38 = vpop.xlane.xlu2 %1171 }
 0x495   : > { %v2584_v10 = vpop.xlane.xlu2 %915 }
 0x49d   : > { %v922_v30 = vpop.xlane.xlu2 %921  ;;  %v1175_v28 = vpop.xlane.xlu0 %1174 }
 0x49e   : > { %v936_v54 = vsub.f32 %v2514_v29, %v922_v30  ;;  %v934_v30 = vsub.f32 %v2503_v17, %v2584_v10 }
 0x4a0   : > { %v948_v36 = vmul.f32 1.442695, %v936_v54  ;;  %v944_v54 = vmul.f32 1.442695, %v934_v30 }
 0x4a2   : > { %1893 = vpow2.f32 %v948_v36 }
 0x4a5   : > { %v928_v22 = vpop.xlane.xlu0 %927  ;;  %v931_v17 = vpop.xlane.xlu2 %930 }
 0x4a6   : > { %v938_v29 = vsub.f32 %v2529_v62, %v928_v22  ;;  %v939_v22 = vsub.f32 %v2525_v51, %v931_v17 }
 0x4a8   : > { %v2587_v12 = vpop.eup %1893  ;;  %v952_v42 = vmul.f32 1.442695, %v938_v29 }
 0x4a9   : > { %v968_v56 = vsel %vm479_vm2, %v2587_v12, 0.0 }
 0x4aa   : > { %969 = vadd.xlane.f32.xlu0 %v968_v56 }
 0x4ad   : > { %v1178_v14 = vpop.xlane.xlu0 %1177 }
 0x4b5   : > { %v913_v16 = vpop.xlane.xlu1 %912  ;;  %v1181_v18 = vpop.xlane.xlu0 %1180 }
 0x4b6   : > { %v933_v37 = vsub.f32 %v2432_v57, %v913_v16 }
 0x4b8   : > { %v942_v4 = vmul.f32 1.442695, %v933_v37 }
 0x4ba   : > { %1895 = vpow2.f32 %v942_v4 }
 0x4bd   : > { %v919_v55 = vpop.xlane.xlu1 %918 }
 0x4be   : > { %v935_v23 = vsub.f32 %v2555_v61, %v919_v55 }
 0x4c0   : > { %v2593_v41 = vpop.eup %1895  ;;  %v946_v9 = vmul.f32 1.442695, %v935_v23 }
 0x4c1   : > { %v959_v25 = vsel %vm479_vm2, %v2593_v41, 0.0 }
 0x4c2   : > { %1897 = vpow2.f32 %v946_v9  ;;  %960 = vadd.xlane.f32.xlu2 %v959_v25 }
 0x4c3   : > { %1899 = vpow2.f32 %v952_v42 }
 0x4c5   : > { %v925_v3 = vpop.xlane.xlu1 %924 }
 0x4c6   : > { %v937_v57 = vsub.f32 %v2561_v26, %v925_v3 }
 0x4c8   : > { %v2599_v24 = vpop.eup %1897  ;;  %v950_v61 = vmul.f32 1.442695, %v937_v57 }
 0x4c9   : > { %v965_v62 = vsel %vm479_vm2, %v2599_v24, 0.0  ;;  %v2605_v47 = vpop.eup %1899 }
 0x4ca   : > { %1901 = vpow2.f32 %v950_v61  ;;  %966 = vadd.xlane.f32.xlu1 %v965_v62  ;;  %v974_v26 = vsel %vm479_vm2, %v2605_v47, 0.0 }
 0x4cb   : > { %1903 = vpow2.f32 %v1168_v8 }
 0x4cc   : > { %1905 = vpow2.f32 %v1164_v20 }
 0x4cd   : > { %1907 = vpow2.f32 %v1166_v52 }
 0x4ce   : > { %1909 = vrcp.f32 %v1175_v28 }
 0x4cf   : > { %1911 = vrcp.f32 %v1172_v38  ;;  %v2638_v38 = vpop.f32.mrf.mxu0 }
 0x4d0   : > { %v2607_v48 = vpop.eup %1901  ;;  %1913 = vrcp.f32 %v1181_v18 }
 0x4d1   : > { %v971_v27 = vsel %vm479_vm2, %v2607_v48, 0.0  ;;  %v2615_v49 = vpop.eup %1903  ;;  %1915 = vrcp.f32 %v1178_v14 }
 0x4d2   : > { %975 = vadd.xlane.f32.xlu1 %v974_v26  ;;  %972 = vadd.xlane.f32.xlu0 %v971_v27  ;;  %v2617_v53 = vpop.eup %1905  ;;  %v1191_v40 = vsel %vm479_vm2, %v2615_v49, 0.0  ;;  %1917 = vpow2.f32 %v944_v54 }
 0x4d3   : > { %v1185_v15 = vsel %vm479_vm2, %v2617_v53, 0.0  ;;  %v2625_v59 = vpop.eup %1907 }
 0x4d4   : > { %v1188_v43 = vsel %vm479_vm2, %v2625_v59, 0.0  ;;  %v1910_v60 = vpop.eup %1909 }
 0x4d5   : > { %v1203_v31 = vmul.f32 %v1910_v60, %v2519_v21  ;;  %v1150_v21 = vsub.f32 %v2440_v5, %v2552_v35  ;;  %v954_v5 = vmul.f32 1.442695, %v939_v22 }
 0x4d7   : > { %v819_v28 = vpop.f32.mrf.mxu0  ;;  %v1162_v16 = vmul.f32 1.442695, %v1150_v21 }
 0x4d9   : > { %1919 = vpow2.f32 %v1162_v16 }
 0x4da   : > { %1002 = vrot.lane.b32.xlu2 %v2131_v32, %s2020_s29  ;;  %1192 = vadd.xlane.f32.xlu1 %v1191_v40  ;;  %v1912_v32 = vpop.eup %1911  ;;  %1921 = vpow2.f32 %v954_v5 }
 0x4db   : > { %1186 = vadd.xlane.f32.xlu0 %v1185_v15  ;;  %v1202_v34 = vmul.f32 %v1912_v32, %v2496_v50  ;;  %v1914_v36 = vpop.eup %1913 }
 0x4dc   : > { %v1916_v50 = vpop.eup %1915  ;;  %v1205_v56 = vmul.f32 %v1914_v36, %v2544_v19  ;;  %v958_v57 = vpop.xlane.xlu2 %957 }
 0x4dd   : > { %v1217_v44 = vpop.permute.xlu1 %1216  ;;  %v1210_v33 = vpack.c.bf16 %v1203_v31, %v1202_v34  ;;  %v1204_v37 = vmul.f32 %v1916_v50, %v2538_v0  ;;  %v1918_v10 = vpop.eup %1917 }
 0x4de   : > { %1244 = vmatpush.bf16.msrb.mxu0 %v1217_v44  ;;  %v962_v55 = vsel %vm479_vm2, %v1918_v10, 0.0 }
 0x4df   : > { %v1211_v4 = vpack.c.bf16 %v1205_v56, %v1204_v37  ;;  %v821_v35 = vpop.f32.mrf.mxu0  ;;  %v2647_v23 = vpop.eup %1919 }
 0x4e0   : > { %v1182_v19 = vsel %vm479_vm2, %v2647_v23, 0.0  ;;  %v2651_v29 = vpop.eup %1921  ;;  %v1757_v42 = vpack.i.bf16 %v821_v35, %v819_v28 }
 0x4e1   : > { %v977_v51 = vsel %vm479_vm2, %v2651_v29, 0.0 }
 0x4e3   : > { %1189 = vadd.xlane.f32.xlu0 %v1188_v43 }
 0x4e5   : > { %v2629_v1 = vpop.permute.xlu1 %1000 }
 0x4e7   : > { %v824_v0 = vpop.f32.mrf.mxu0 }
 0x4ed   : > { %v1215_v7 = vpop.permute.xlu1 %1214 }
 0x4ee   : > { %1245 = vmatpush.bf16.msrb.mxu0 %v1215_v7 }
 0x4ef   : > { %v826_v9 = vpop.f32.mrf.mxu0 }
 0x4f0   : > { %v1772_v39 = vpack.i.bf16 %v826_v9, %v824_v0 }
 0x4f1   : > { %1587 = vmatmul.msk.bf16.vlgmr.msrb.gmra.mxu0 %vm479_vm2, %v1210_v33 }
 0x4f7   : > { %v829_v25 = vpop.f32.mrf.mxu0 }
 0x4ff   : > { %v831_v3 = vpop.f32.mrf.mxu0 }
 0x500   : > { %v1787_v62 = vpack.i.bf16 %v831_v3, %v829_v25 }
 0x501   : > { %1588 = vmatmul.msk.bf16.gmra.mxu0 %vm479_vm2, %v1211_v4 }
 0x503   : > { %963 = vadd.xlane.f32.xlu2 %v962_v55 }
 0x507   : > { %v834_v61 = vpop.f32.mrf.mxu0 }
 0x50b   : > { %1183 = vadd.xlane.f32.xlu2 %v1182_v19 }
 0x50f   : > { %v836_v26 = vpop.f32.mrf.mxu0 }
 0x510   : > { %v1802_v40 = vpack.i.bf16 %v836_v26, %v834_v61 }
 0x513   : > { %978 = vadd.xlane.f32.xlu2 %v977_v51 }
 0x51d   : > { %v970_v44 = vpop.xlane.xlu0 %969 }
 0x52b   : > { %1758 = vrot.lane.b32.xlu2 %v1757_v42, %s2022_s18 }
 0x533   : > { %1773 = vrot.lane.b32.xlu2 %v1772_v39, %s2022_s18 }
 0x535   : > { %v961_v11 = vpop.xlane.xlu2 %960 }
 0x536   : > { %1923 = vrcp.f32 %v961_v11 }
 0x537   : > { %1925 = vrcp.f32 %v958_v57  ;;  %v610_v57 = vpop.f32.mrf.mxu1 }
 0x53b   : > { %1788 = vrot.lane.b32.xlu2 %v1787_v62, %s2022_s18 }
 0x53c   : > { %v1924_v8 = vpop.eup %1923 }
 0x53d   : > { %v1003_v20 = vpop.permute.xlu2 %1002  ;;  %v1926_v46 = vpop.eup %1925  ;;  %v989_v27 = vmul.f32 %v1924_v8, %v2593_v41 }
 0x53e   : > { %1030 = vmatpush.bf16.msra.mxu1 %v1003_v20  ;;  %v988_v52 = vmul.f32 %v1926_v46, %v2571_v6  ;;  %v967_v60 = vpop.xlane.xlu1 %966 }
 0x53f   : > { %1927 = vrcp.f32 %v967_v60  ;;  %v612_v39 = vpop.f32.mrf.mxu1 }
 0x540   : > { %v996_v15 = vpack.c.bf16 %v989_v27, %v988_v52 }
 0x542   : > { %1031 = vmatpush.bf16.msra.mxu1 %v2629_v1 }
 0x543   : > { %1803 = vrot.lane.b32.xlu2 %v1802_v40, %s2022_s18 }
 0x545   : > { %1579 = vmatmul.msk.bf16.vlgmr.msra.gmra.mxu1 %vm479_vm2, %v996_v15  ;;  %v973_v14 = vpop.xlane.xlu0 %972  ;;  %v1928_v41 = vpop.eup %1927 }
 0x546   : > { %v991_v30 = vmul.f32 %v1928_v41, %v2599_v24  ;;  %v976_v54 = vpop.xlane.xlu1 %975 }
 0x54e   : > { %v1187_v6 = vpop.xlane.xlu0 %1186  ;;  %v1193_v24 = vpop.xlane.xlu1 %1192 }
 0x556   : > { %v1190_v17 = vpop.xlane.xlu0 %1189 }
 0x56e   : > { %v1247_v43 = vpop.f32.mrf.mxu0 }
 0x576   : > { %v964_v32 = vpop.xlane.xlu2 %963  ;;  %v1249_v31 = vpop.f32.mrf.mxu0 }
 0x577   : > { %1929 = vrcp.f32 %v964_v32  ;;  %v1767_v34 = vpack.i.bf16 %v1249_v31, %v1247_v43 }
 0x578   : > { %1931 = vrcp.f32 %v1187_v6 }
 0x579   : > { %1768 = vrot.lane.b32.xlu1 %v1767_v34, %s2023_s19 }
 0x57d   : > { %v1930_v1 = vpop.eup %1929 }
 0x57e   : > { %v1184_v7 = vpop.xlane.xlu2 %1183  ;;  %v1252_v33 = vpop.f32.mrf.mxu0  ;;  %v990_v18 = vmul.f32 %v1930_v1, %v1918_v10 }
 0x57f   : > { %1933 = vrcp.f32 %v1184_v7  ;;  %v1932_v21 = vpop.eup %1931 }
 0x580   : > { %v997_v36 = vpack.c.bf16 %v991_v30, %v990_v18  ;;  %1935 = vrcp.f32 %v973_v14  ;;  %v1207_v16 = vmul.f32 %v1932_v21, %v2617_v53  ;;  %v1611_v14 = vld [vmem:[%s2773_s4] sm:$0xff] }
 0x581   : > { %1937 = vrcp.f32 %v970_v44 }
 0x582   : > { %1580 = vmatmul.msk.bf16.gmra.mxu1 %vm479_vm2, %v997_v36  ;;  %1939 = vrcp.f32 %v1190_v17 }
 0x583   : > { %1941 = vrcp.f32 %v1193_v24 }
 0x585   : > { %v1934_v50 = vpop.eup %1933 }
 0x586   : > { %v1254_v56 = vpop.f32.mrf.mxu0  ;;  %v1206_v28 = vmul.f32 %v1934_v50, %v2647_v23  ;;  %v1936_v10 = vpop.eup %1935 }
 0x587   : > { %v1782_v37 = vpack.i.bf16 %v1254_v56, %v1252_v33  ;;  %v1938_v22 = vpop.eup %1937  ;;  %v993_v55 = vmul.f32 %v1936_v10, %v2607_v48  ;;  %v979_v35 = vpop.xlane.xlu2 %978 }
 0x588   : > { %v1212_v4 = vpack.c.bf16 %v1207_v16, %v1206_v28  ;;  %v992_v5 = vmul.f32 %v1938_v22, %v2587_v12  ;;  %v1940_v19 = vpop.eup %1939  ;;  %1943 = vrcp.f32 %v979_v35 }
 0x589   : > { %1783 = vrot.lane.b32.xlu1 %v1782_v37, %s2023_s19  ;;  %v1942_v53 = vpop.eup %1941  ;;  %v1208_v0 = vmul.f32 %v1940_v19, %v2625_v59  ;;  %1945 = vrcp.f32 %v976_v54 }
 0x58a   : > { %1589 = vmatmul.msk.bf16.gmra.mxu0 %vm479_vm2, %v1212_v4  ;;  %v998_v23 = vpack.c.bf16 %v993_v55, %v992_v5  ;;  %v1209_v51 = vmul.f32 %v1942_v53, %v2615_v49 }
 0x58c   : > { %v1213_v9 = vpack.c.bf16 %v1209_v51, %v1208_v0 }
 0x58e   : > { %v1944_v25 = vpop.eup %1943 }
 0x58f   : > { %v1946_v48 = vpop.eup %1945  ;;  %v995_v42 = vmul.f32 %v1944_v25, %v2651_v29  ;;  %v1612_v29 = vld [vmem:[%s2773_s4 + $0x8] sm:$0xff]  ;;  %v1759_v31 = vpop.permute.xlu2 %1758 }
 0x590   : > { %v994_v12 = vmul.f32 %v1946_v48, %v2605_v47  ;;  %1431 = vmatpush.bf16.msra.mxu2 %v1612_v29  ;;  %v1761_v34 = vunpack.i.h.bf16 %v1759_v31  ;;  %v1760_v6 = vunpack.i.l.bf16 %v1759_v31 }
 0x592   : > { %1581 = vmatmul.msk.bf16.gmra.mxu1 %vm479_vm2, %v998_v23  ;;  %v999_v3 = vpack.c.bf16 %v995_v42, %v994_v12  ;;  %v1364_v18 = vsel %vm425_vm1, %v2638_v38, %v1761_v34  ;;  %v1363_v30 = vsel %vm425_vm1, %v2631_v2, %v1760_v6 }
 0x594   : > { %1432 = vmatpush.bf16.msra.mxu2 %v1611_v14 }
 0x597   : > { %v1774_v37 = vpop.permute.xlu2 %1773 }
 0x598   : > { %v1776_v17 = vunpack.i.h.bf16 %v1774_v37  ;;  %v1775_v4 = vunpack.i.l.bf16 %v1774_v37 }
 0x59a   : > { %1590 = vmatmul.msk.bf16.gmra.mxu0 %vm479_vm2, %v1213_v9  ;;  %v1366_v22 = vsel %vm425_vm1, %v612_v39, %v1776_v17  ;;  %v1365_v55 = vsel %vm425_vm1, %v610_v57, %v1775_v4 }
 0x59f   : > { %v1789_v9 = vpop.permute.xlu2 %1788 }
 0x5a0   : > { %v1791_v25 = vunpack.i.h.bf16 %v1789_v9  ;;  %v1790_v48 = vunpack.i.l.bf16 %v1789_v9 }
 0x5a2   : > { %1582 = vmatmul.msk.bf16.gmra.mxu1 %vm479_vm2, %v999_v3  ;;  %v1368_v39 = vsel %vm425_vm1, %v2381_v63, %v1791_v25 }
 0x5c2   : > { %v1033_v61 = vpop.f32.mrf.mxu1 }
 0x5ca   : > { %v1035_v11 = vpop.f32.mrf.mxu1 }
 0x5cb   : > { %v1762_v59 = vpack.i.bf16 %v1035_v11, %v1033_v61  ;;  %v1367_v61 = vsel %vm425_vm1, %v2373_v58, %v1790_v48 }
 0x5cd   : > { %1763 = vrot.lane.b32.xlu0 %v1762_v59, %s2024_s20 }
 0x5eb   : > { %v1769_v41 = vpop.permute.xlu1 %1768 }
 0x5ec   : > { %v1771_v54 = vunpack.i.h.bf16 %v1769_v41  ;;  %v1770_v36 = vunpack.i.l.bf16 %v1769_v41 }
 0x5fb   : > { %v1784_v38 = vpop.permute.xlu1 %1783 }
 0x5fc   : > { %v1786_v5 = vunpack.i.h.bf16 %v1784_v38  ;;  %v1785_v35 = vunpack.i.l.bf16 %v1784_v38 }
 0x5ff   : > { %v1038_v49 = vpop.f32.mrf.mxu1 }
 0x607   : > { %v1040_v62 = vpop.f32.mrf.mxu1  ;;  %v1257_v8 = vpop.f32.mrf.mxu0 }
 0x608   : > { %v1777_v20 = vpack.i.bf16 %v1040_v62, %v1038_v49 }
 0x60a   : > { %1778 = vrot.lane.b32.xlu0 %v1777_v20, %s2024_s20 }
 0x60f   : > { %v1043_v47 = vpop.f32.mrf.mxu1  ;;  %v1259_v46 = vpop.f32.mrf.mxu0 }
 0x610   : > { %v1797_v26 = vpack.i.bf16 %v1259_v46, %v1257_v8 }
 0x612   : > { %1798 = vrot.lane.b32.xlu1 %v1797_v26, %s2023_s19 }
 0x617   : > { %v1045_v27 = vpop.f32.mrf.mxu1  ;;  %v1262_v52 = vpop.f32.mrf.mxu0 }
 0x618   : > { %v1792_v40 = vpack.i.bf16 %v1045_v27, %v1043_v47  ;;  %v1804_v47 = vpop.permute.xlu2 %1803 }
 0x619   : > { %v1806_v46 = vunpack.i.h.bf16 %v1804_v47  ;;  %v1805_v63 = vunpack.i.l.bf16 %v1804_v47 }
 0x61a   : > { %1793 = vrot.lane.b32.xlu0 %v1792_v40, %s2024_s20 }
 0x61b   : > { %v1370_v40 = vsel %vm425_vm1, %v2406_v45, %v1806_v46 }
 0x61f   : > { %v1048_v15 = vpop.f32.mrf.mxu1  ;;  %v1264_v44 = vpop.f32.mrf.mxu0 }
 0x620   : > { %v1812_v43 = vpack.i.bf16 %v1264_v44, %v1262_v52 }
 0x622   : > { %1813 = vrot.lane.b32.xlu1 %v1812_v43, %s2023_s19  ;;  %s1474_s19 = scalar_lea.hbm %s2775_s6, %s1613_s15 }
 0x623   : > { %s1477_s26 = sshll.u32 %s1474_s19, 4  ;;  %s1478_s26 = int_to_ptr.hbm [resolvable:$true] %s1477_s26 }
 0x624   : > { %s1961_s29 = sshra.s32 %s1478_s26, 4  ;;  %s1962_s29 = int_to_ptr.hbm [resolvable:$true] %s1961_s29 }
 0x625   : > { %s1963_s25 = scalar_lea.hbm %s1962_s29, 64  ;;  %p1968_p0 = scmp.lt.s32.totalorder %s1962_s29, %s2775_s6 }
 0x626   : > { %p1964_p11 = scmp.ne.s32.totalorder %s1962_s29, %s1963_s25  ;;  %p1969_p1 = scmp.lt.s32.totalorder %s1967_s11, %s1963_s25 }
 0x627   : > { %v1050_v60 = vpop.f32.mrf.mxu1 }
 0x628   : > { %v1807_v32 = vpack.i.bf16 %v1050_v60, %v1048_v15  ;;  %v1369_v15 = vsel %vm425_vm1, %v2391_v13, %v1805_v63  ;;  %v1818_v13 = vld [vmem:[%s2774_s5] ss:$0 sm:$0xff]  ;;  %p1965_p12 = pnand %p1964_p11, %p2099_p5  ;;  %p1970_p2 = por %p1969_p1, %p1968_p0 }
 0x62a   : > { %1808 = vrot.lane.b32.xlu0 %v1807_v32, %s2024_s20  ;;  %s1475_s20 = sshll.u32 %s244_s14, 4  ;;  %p1966_p13 = pneg %p1965_p12  ;;  %s1476_s20 = int_to_ptr.vmem [resolvable:$true] %s1475_s20 }
 0x62c   : > { %p1971_p3 = pnand %p1970_p2, %p1966_p13 }
 0x63f   : > { %v1764_v1 = vpop.permute.xlu0 %1763 }
 0x640   : > { %v1766_v7 = vunpack.i.h.bf16 %v1764_v1  ;;  %v1765_v33 = vunpack.i.l.bf16 %v1764_v1 }
 0x642   : > { %v1373_v21 = vsel %vm1371_vm3, %v1364_v18, %v1766_v7  ;;  %v1372_v50 = vsel %vm1371_vm3, %v1363_v30, %v1765_v33 }
 0x643   : > { %v1381_v56 = vsel %vm1380_vm4, %v1372_v50, %v1770_v36  ;;  %v1382_v28 = vsel %vm1380_vm4, %v1373_v21, %v1771_v54 }
 0x644   : > { %v1389_v16 = vpack.c.bf16 %v1382_v28, %v1381_v56 }
 0x646   : > { %1599 = vmatmul.msk.bf16.vlgmr.msra.gmra.mxu2 %vm283_vm0, %v1389_v16 }
 0x67c   : > { %v1779_v10 = vpop.permute.xlu0 %1778 }
 0x67d   : > { %v1781_v24 = vunpack.i.h.bf16 %v1779_v10  ;;  %v1780_v2 = vunpack.i.l.bf16 %v1779_v10 }
 0x67f   : > { %v1375_v23 = vsel %vm1371_vm3, %v1366_v22, %v1781_v24  ;;  %v1374_v19 = vsel %vm1371_vm3, %v1365_v55, %v1780_v2 }
 0x680   : > { %v1383_v53 = vsel %vm1380_vm4, %v1374_v19, %v1785_v35  ;;  %v1384_v0 = vsel %vm1380_vm4, %v1375_v23, %v1786_v5 }
 0x681   : > { %v1390_v51 = vpack.c.bf16 %v1384_v0, %v1383_v53 }
 0x683   : > { %1600 = vmatmul.msk.bf16.gmra.mxu2 %vm283_vm0, %v1390_v51 }
 0x684   : > { %v1799_v42 = vpop.permute.xlu1 %1798 }
 0x685   : > { %v1801_v11 = vunpack.i.h.bf16 %v1799_v42  ;;  %v1800_v59 = vunpack.i.l.bf16 %v1799_v42 }
 0x68c   : > { %v1794_v12 = vpop.permute.xlu0 %1793 }
 0x68d   : > { %v1796_v3 = vunpack.i.h.bf16 %v1794_v12  ;;  %v1795_v57 = vunpack.i.l.bf16 %v1794_v12 }
 0x68f   : > { %v1377_v49 = vsel %vm1371_vm3, %v1368_v39, %v1796_v3  ;;  %v1376_v62 = vsel %vm1371_vm3, %v1367_v61, %v1795_v57 }
 0x690   : > { %v1385_v8 = vsel %vm1380_vm4, %v1376_v62, %v1800_v59  ;;  %v1386_v20 = vsel %vm1380_vm4, %v1377_v49, %v1801_v11 }
 0x691   : > { %v1391_v29 = vpack.c.bf16 %v1386_v20, %v1385_v8 }
 0x693   : > { %1601 = vmatmul.msk.bf16.gmra.mxu2 %vm283_vm0, %v1391_v29 }
 0x694   : > { %v1814_v26 = vpop.permute.xlu1 %1813 }
 0x695   : > { %v1816_v44 = vunpack.i.h.bf16 %v1814_v26  ;;  %v1815_v43 = vunpack.i.l.bf16 %v1814_v26 }
 0x69c   : > { %v1809_v58 = vpop.permute.xlu0 %1808 }
 0x69d   : > { %v1811_v27 = vunpack.i.h.bf16 %v1809_v58  ;;  %v1810_v52 = vunpack.i.l.bf16 %v1809_v58 }
 0x69f   : > { %v1379_v14 = vsel %vm1371_vm3, %v1370_v40, %v1811_v27  ;;  %v1378_v60 = vsel %vm1371_vm3, %v1369_v15, %v1810_v52 }
 0x6a0   : > { %v1387_v32 = vsel %vm1380_vm4, %v1378_v60, %v1815_v43  ;;  %v1388_v31 = vsel %vm1380_vm4, %v1379_v14, %v1816_v44 }
 0x6a1   : > { %v1392_v34 = vpack.c.bf16 %v1388_v31, %v1387_v32 }
 0x6a3   : > { %1602 = vmatmul.msk.bf16.gmra.mxu2 %vm283_vm0, %v1392_v34 }
 0x6c9   : > { %v1434_v45 = vpop.f32.mrf.mxu2 }
 0x6ca   : > { %v1435_v6 = vadd.f32 %v1818_v13, %v1434_v45 }
 0x6cc   : > { %1454 = vst.msk [vmem:[%s244_s14] sm:$0xff] %vm283_vm0, %v1435_v6 }
 0x6d1   : > { %v1436_v41 = vpop.f32.mrf.mxu2 }
 0x6d2   : > { %v1437_v1 = vadd.f32 %v1818_v13, %v1436_v41 }
 0x6d4   : > { %1455 = vst.msk [vmem:[%s244_s14 + $0x8] sm:$0xff] %vm283_vm0, %v1437_v1 }
 0x706   : > { %v1439_v7 = vpop.f32.mrf.mxu2 }
 0x707   : > { %v1440_v33 = vadd.f32 %v1818_v13, %v1439_v7 }
 0x709   : > { %1456 = vst.msk [vmem:[%s244_s14 + $0x10] sm:$0xff] %vm283_vm0, %v1440_v33 }
 0x70e   : > { %v1441_v18 = vpop.f32.mrf.mxu2 }
 0x70f   : > { %v1442_v30 = vadd.f32 %v1818_v13, %v1441_v18 }
 0x711   : > { %1457 = vst.msk [vmem:[%s244_s14 + $0x18] sm:$0xff] %vm283_vm0, %v1442_v30 }
 0x716   : > { %v1444_v54 = vpop.f32.mrf.mxu2 }
 0x717   : > { %v1445_v36 = vadd.f32 %v1818_v13, %v1444_v54 }
 0x719   : > { %1458 = vst.msk [vmem:[%s244_s14 + $0x20] sm:$0xff] %vm283_vm0, %v1445_v36 }
 0x71e   : > { %v1446_v21 = vpop.f32.mrf.mxu2 }
 0x71f   : > { %v1447_v50 = vadd.f32 %v1818_v13, %v1446_v21 }
 0x721   : > { %1459 = vst.msk [vmem:[%s244_s14 + $0x28] sm:$0xff] %vm283_vm0, %v1447_v50 }
 0x726   : > { %v1449_v56 = vpop.f32.mrf.mxu2 }
 0x727   : > { %v1450_v28 = vadd.f32 %v1818_v13, %v1449_v56 }
 0x729   : > { %1460 = vst.msk [vmem:[%s244_s14 + $0x30] sm:$0xff] %vm283_vm0, %v1450_v28 }
 0x72e   : > { %v1451_v16 = vpop.f32.mrf.mxu2 }
 0x72f   : > { %v1452_v37 = vadd.f32 %v1818_v13, %v1451_v16 }
 0x731   : > { %1461 = vst.msk [vmem:[%s244_s14 + $0x38] sm:$0xff] %vm283_vm0, %v1452_v37 }
 0x732   : > { %1974 = shalt.err (!%p1971_p3)
}
 0x733   : > { %s2025_s10 = smov 128  }
 0x734   : > { %1703 = dma.vmem_to_hbm [thread:$0]  (%p2099_p5), %s1476_s20, 1024, %s1478_s26, %s1463_s28, %s2025_s10, %s2025_s10, %s2022_s18  }
 0x735 PF: > { %p1709_p4 = scmp.ge.s32.totalorder %s2009_s24, 2  ;;  %s1492_s14 = sand.u32 1, %s1997_s21  }
 0x736   : > { %s1493_s16 = scalar_lea.sflag [#allocation3], %s1492_s14 }
 0x737   : > { %p1706_p7 = pnand %p1709_p4, %p2103_p6 }
 0x739   : > { %p1707_p8 = pneg %p1706_p7 }
 0x73b   : > { %1992 = dma.done.wait (%p1707_p8), %s1493_s16, 1024  }
 0x73c   : > { %1994 = vsyncadd (%p1707_p8), %s1493_s16, 4294966272  ;;  %p16_p9 = scmp.ge.s32.totalorder %s2086_s27, 4   ;;  %s2778_s21 = smov %s2001_s22 }
 0x73d   : > { %s2779_s22 = smov %s2005_s23  ;;  %s2780_s23 = smov %s2097_s30 }
 0x73e   : > { %s2781_s24 = smov %s2086_s27  ;;  %18 = sbr.rel (!%p16_p9) target bundleno = 3 (0x3), region = 79 }
 0x743   :  { %1499 = vsyncpa [#allocation3], 1 }
 0x744   :  { %1501 = vsyncpa [#allocation3 + $0x1], 1 }

</bundles_post_ra>
